<compile_context>
chip_gen: v7x
topology: tpu7x:2x2x1
jax: 0.10.0
libtpu: 0.0.40
codegen_flags: <defaults>
</compile_context>

<pallas_src>
import functools

import jax
import jax.numpy as jnp
from jax.experimental import pallas as pl
from jax.experimental.pallas import tpu as pltpu

LANE = 128


def _round_up(x, m):
    return (x + m - 1) // m * m


# ----------------------------- Pallas kernels ------------------------------


def _mm_bias_kernel(x_ref, w_ref, b_ref, o_ref, acc_ref, *, relu):
    """Tiled matmul with f32 accumulator: o = (relu?)(x @ w + b)."""
    @pl.when(pl.program_id(2) == 0)
    def _():
        acc_ref[...] = jnp.zeros_like(acc_ref)

    acc_ref[...] += jnp.dot(x_ref[...], w_ref[...],
                            preferred_element_type=jnp.float32)

    @pl.when(pl.program_id(2) == pl.num_programs(2) - 1)
    def _():
        r = acc_ref[...] + b_ref[...]
        if relu:
            r = jnp.maximum(r, 0.0)
        o_ref[...] = r.astype(o_ref.dtype)


def matmul_bias(x, w, b, relu, out_dtype=jnp.bfloat16):
    """(M,K)@(K,N)+b: bf16 MXU inputs, f32 accumulation, tiled + pipelined."""
    M, K = x.shape
    K2, N = w.shape
    assert K == K2 and N % LANE == 0 and b.shape == (1, N)

    tn = LANE
    tm = 256 if M >= 256 else _round_up(M, 8)
    Mp = _round_up(M, tm)
    if Mp != M:
        x = jnp.pad(x, ((0, Mp - M), (0, 0)))

    if K <= 512:
        tk = K                                   # full-K block (no K tiling)
    else:
        tk = 256
        Kp = _round_up(K, tk)
        if Kp != K:
            x = jnp.pad(x, ((0, 0), (0, Kp - K)))
            w = jnp.pad(w, ((0, Kp - K), (0, 0)))
        K = Kp

    grid = (Mp // tm, N // tn, K // tk)
    bytes_io = (Mp * K * x.dtype.itemsize + K * N * w.dtype.itemsize
                + Mp * N * jnp.dtype(out_dtype).itemsize)
    out = pl.pallas_call(
        functools.partial(_mm_bias_kernel, relu=relu),
        out_shape=jax.ShapeDtypeStruct((Mp, N), out_dtype),
        grid_spec=pltpu.PrefetchScalarGridSpec(
            num_scalar_prefetch=0,
            grid=grid,
            in_specs=[
                pl.BlockSpec((tm, tk), lambda i, j, k: (i, k)),
                pl.BlockSpec((tk, tn), lambda i, j, k: (k, j)),
                pl.BlockSpec((1, tn), lambda i, j, k: (0, j)),
            ],
            out_specs=pl.BlockSpec((tm, tn), lambda i, j, k: (i, j)),
            scratch_shapes=[pltpu.VMEM((tm, tn), jnp.float32)],
        ),
        compiler_params=pltpu.CompilerParams(
            dimension_semantics=("parallel", "parallel", "arbitrary")),
        cost_estimate=pl.CostEstimate(flops=2 * Mp * N * K, transcendentals=0,
                                      bytes_accessed=bytes_io),
    )(x, w, b)
    return out[:M] if Mp != M else out


def _conv_taps_kernel(x_ref, w_ref, b_ref, o_ref, *, kh, kw, s, A, Ho, Wo, relu):
    """KxK conv as kh*kw accumulated tap matmuls on stride-phase slabs."""
    cout = o_ref.shape[-1]
    acc = jnp.zeros((Ho * Wo, cout), jnp.float32)
    for dh in range(kh):
        for dw in range(kw):
            tap = dh * kw + dw
            pidx = (dh % s) * s + (dw % s)            # stride phase
            oh, ow = dh // s, dw // s                 # offset inside the phase
            r0 = pidx * A + oh
            win = x_ref[0, r0:r0 + Ho, ow:ow + Wo, :]  # (Ho, Wo, Cin), static slices
            win = win.reshape(Ho * Wo, win.shape[-1])
            acc = acc + jnp.dot(win, w_ref[tap],
                                preferred_element_type=jnp.float32)
    r = acc + b_ref[...]
    if relu:
        r = jnp.maximum(r, 0.0)
    o_ref[0] = r.astype(o_ref.dtype)


def conv_taps(x_nhwc, w_taps, b, ksz, s, pad, relu, out_dtype=jnp.bfloat16):
    """KxK conv (stride s, zero pad) without materialising im2col in HBM."""
    Nb, H, W, Cin = x_nhwc.shape
    kk, cin_w, coutp = w_taps.shape
    assert kk == ksz * ksz and cin_w == Cin and coutp % LANE == 0

    xp = jnp.pad(x_nhwc, ((0, 0), (pad, pad), (pad, pad), (0, 0)))
    Hp, Wp = H + 2 * pad, W + 2 * pad
    Ho = (Hp - ksz) // s + 1
    Wo = (Wp - ksz) // s + 1
    A = Ho + (ksz - 1) // s
    Bw = Wo + (ksz - 1) // s
    Hext = max(Hp, s * A)
    Wext = max(Wp, s * Bw)
    if (Hext, Wext) != (Hp, Wp):
        xp = jnp.pad(xp, ((0, 0), (0, Hext - Hp), (0, Wext - Wp), (0, 0)))
    # stride-phase decomposition: one input-sized relayout, no 9x expansion.
    phases = jnp.concatenate(
        [xp[:, ph:ph + s * A:s, pw:pw + s * Bw:s, :]
         for ph in range(s) for pw in range(s)], axis=1)  # (Nb, s*s*A, Bw, Cin)

    tn = LANE
    grid = (Nb, coutp // tn)
    kernel = functools.partial(_conv_taps_kernel, kh=ksz, kw=ksz, s=s, A=A,
                               Ho=Ho, Wo=Wo, relu=relu)
    out = pl.pallas_call(
        kernel,
        out_shape=jax.ShapeDtypeStruct((Nb, Ho * Wo, coutp), out_dtype),
        grid_spec=pltpu.PrefetchScalarGridSpec(
            num_scalar_prefetch=0,
            grid=grid,
            in_specs=[
                pl.BlockSpec((1, s * s * A, Bw, Cin),
                             lambda bi, j: (bi, 0, 0, 0)),
                pl.BlockSpec((ksz * ksz, Cin, tn), lambda bi, j: (0, 0, j)),
                pl.BlockSpec((1, tn), lambda bi, j: (0, j)),
            ],
            out_specs=pl.BlockSpec((1, Ho * Wo, tn), lambda bi, j: (bi, 0, j)),
        ),
        compiler_params=pltpu.CompilerParams(
            dimension_semantics=("parallel", "parallel")),
    )(phases, w_taps, b)
    return out.reshape(Nb, Ho, Wo, coutp)


def _conv3_se_kernel(x2_ref, sc_ref, w3_ref, b3_ref, w1_ref, b1_ref,
                     w2_ref, b2_ref, o_ref, *, inv_hw):
    """conv3(1x1)+BN3, SE gate, channel scale, shortcut add, final ReLU."""
    o3 = jnp.dot(x2_ref[0], w3_ref[...],
                 preferred_element_type=jnp.float32) + b3_ref[...]    # (HW, C)
    # AdaptiveAvgPool2d(1) == mean over the spatial axis.
    y = jnp.sum(o3, axis=0, keepdims=True) * inv_hw                   # (1, C)
    h = jnp.dot(y, w1_ref[...], preferred_element_type=jnp.float32) + b1_ref[...]
    h = jnp.maximum(h, 0.0)                                           # ReLU
    z = jnp.dot(h, w2_ref[...], preferred_element_type=jnp.float32) + b2_ref[...]
    gate = pl.reciprocal(1.0 + jnp.exp(-z), approx=True)              # sigmoid (EUP)
    sc = sc_ref[0].astype(jnp.float32)
    o_ref[0] = jnp.maximum(sc + o3 * gate, 0.0).astype(o_ref.dtype)


def conv3_se_fuse(out2, sc, w3, b3, se_w1, se_b1, se_w2, se_b2):
    Nb, HW, c2p = out2.shape
    c3p = w3.shape[1]
    csep = se_w1.shape[1]
    assert sc.shape == (Nb, HW, c3p)
    kernel = functools.partial(_conv3_se_kernel, inv_hw=1.0 / HW)
    return pl.pallas_call(
        kernel,
        out_shape=jax.ShapeDtypeStruct((Nb, HW, c3p), jnp.float32),
        grid_spec=pltpu.PrefetchScalarGridSpec(
            num_scalar_prefetch=0,
            grid=(Nb,),
            in_specs=[
                pl.BlockSpec((1, HW, c2p), lambda b: (b, 0, 0)),
                pl.BlockSpec((1, HW, c3p), lambda b: (b, 0, 0)),
                pl.BlockSpec((c2p, c3p), lambda b: (0, 0)),
                pl.BlockSpec((1, c3p), lambda b: (0, 0)),
                pl.BlockSpec((c3p, csep), lambda b: (0, 0)),
                pl.BlockSpec((1, csep), lambda b: (0, 0)),
                pl.BlockSpec((csep, c3p), lambda b: (0, 0)),
                pl.BlockSpec((1, c3p), lambda b: (0, 0)),
            ],
            out_specs=pl.BlockSpec((1, HW, c3p), lambda b: (b, 0, 0)),
        ),
        compiler_params=pltpu.CompilerParams(
            dimension_semantics=("parallel",)),
    )(out2, sc, w3, b3, se_w1, se_b1, se_w2, se_b2)


# ------------------------------- JAX glue -----------------------------------


def _strided_1x1_view(x, s, pad):
    if pad:
        x = jnp.pad(x, ((0, 0), (pad, pad), (pad, pad), (0, 0)))
    return x[:, ::s, ::s, :]


def conv1x1(x, w_col, b, s, pad, relu, out_dtype=jnp.bfloat16):
    xs = _strided_1x1_view(x, s, pad)
    Nb, Ho, Wo, C = xs.shape
    out = matmul_bias(xs.reshape(Nb * Ho * Wo, C), w_col, b, relu, out_dtype)
    return out.reshape(Nb, Ho, Wo, -1)


def conv_bn_act(x, w_taps, b, ksz, s, pad, relu):
    if ksz == 1:
        return conv1x1(x, w_taps[0], b, s, pad, relu)
    return conv_taps(x, w_taps, b, ksz, s, pad, relu)


def resnet50_down_block(x_nchw, params, kernel_size, stride, padding,
                        out_channels):
    """Forward pass of ResNet50DownBlock (eval-mode BN folded). NCHW in/out."""
    x = jnp.transpose(x_nchw, (0, 2, 3, 1)).astype(jnp.bfloat16)   # NHWC bf16

    # x_shortcut = extra(x): 1x1 conv (stride[3]) + BN (folded).
    sc = conv1x1(x, params["we"][0], params["be"], stride[3], 0, relu=False)

    # main path: conv1/bn1/relu -> conv2/bn2/relu.
    out = conv_bn_act(x, params["w1"], params["b1"],
                      kernel_size[0], stride[0], padding[0], relu=True)
    out = conv_bn_act(out, params["w2"], params["b2"],
                      kernel_size[1], stride[1], padding[1], relu=True)

    # conv3/bn3 (no relu) fused with SE + shortcut add + final ReLU.
    c3p = params["b3"].shape[1]
    if kernel_size[2] == 1:
        out_v = _strided_1x1_view(out, stride[2], padding[2])
        w3, b3 = params["w3"][0], params["b3"]
    else:
        # TODO(synk): a non-1x1 conv3 is computed unfused, then fed through the
        # SE kernel with an identity 1x1 weight.
        out_v = conv_taps(out, params["w3"], params["b3"],
                          kernel_size[2], stride[2], padding[2], relu=False)
        w3 = jnp.eye(c3p, dtype=jnp.bfloat16)
        b3 = jnp.zeros((1, c3p), jnp.float32)

    Nb, Ho, Wo, _ = out_v.shape
    out2 = out_v.reshape(Nb, Ho * Wo, out_v.shape[-1])
    sc2 = sc.reshape(Nb, Ho * Wo, c3p)

    fused = conv3_se_fuse(out2, sc2, w3, b3,
                          params["se_w1"], params["se_b1"],
                          params["se_w2"], params["se_b2"])
    y = fused[..., :out_channels].reshape(Nb, Ho, Wo, out_channels)
    return jnp.transpose(y, (0, 3, 1, 2))                          # NHWC -> NCHW


# --------------------------- deterministic params ---------------------------


def _bn_params(key, c):
    k1, k2, k3, k4 = jax.random.split(key, 4)
    gamma = 1.0 + 0.1 * jax.random.normal(k1, (c,), jnp.float32)
    beta = 0.1 * jax.random.normal(k2, (c,), jnp.float32)
    mean = 0.1 * jax.random.normal(k3, (c,), jnp.float32)
    var = 0.5 + jax.random.uniform(k4, (c,), jnp.float32)
    return gamma, beta, mean, var


def fold_bn(w_col, b, gamma, beta, mean, var, eps=1e-5):
    """Fold eval-mode BatchNorm into the preceding conv (exact algebra)."""
    scale = gamma / jnp.sqrt(var + eps)
    return w_col * scale[None, :], (b - mean) * scale + beta


def _prep_conv(key, cin_real, cin_pad, cout_real, cout_pad, ksz):
    """Random torch-style conv+BN -> folded, zero-padded, tap-major, bf16."""
    kw_, kb_, kbn = jax.random.split(key, 3)
    w = 0.1 * jax.random.normal(kw_, (cout_real, cin_real, ksz, ksz), jnp.float32)
    b = 0.05 * jax.random.normal(kb_, (cout_real,), jnp.float32)
    col = jnp.transpose(w, (2, 3, 1, 0)).reshape(ksz * ksz * cin_real, cout_real)
    col, b = fold_bn(col, b, *_bn_params(kbn, cout_real))
    taps = col.reshape(ksz * ksz, cin_real, cout_real)
    taps = jnp.pad(taps, ((0, 0), (0, cin_pad - cin_real),
                          (0, cout_pad - cout_real)))
    b = jnp.pad(b, (0, cout_pad - cout_real)).reshape(1, cout_pad)
    return taps.astype(jnp.bfloat16), b.astype(jnp.float32)


def init_params(key, in_channel, outs, kernel_size):
    c1p, c2p, c3p = (_round_up(c, LANE) for c in outs)
    cse = max(outs[2] // 16, 1)
    csep = _round_up(cse, LANE)
    ks = jax.random.split(key, 8)

    w1, b1 = _prep_conv(ks[0], in_channel, in_channel, outs[0], c1p, kernel_size[0])
    w2, b2 = _prep_conv(ks[1], outs[0], c1p, outs[1], c2p, kernel_size[1])
    w3, b3 = _prep_conv(ks[2], outs[1], c2p, outs[2], c3p, kernel_size[2])
    we, be = _prep_conv(ks[3], in_channel, in_channel, outs[2], c3p, 1)

    # SE MLP (weights stored transposed vs. nn.Linear: (in, out)); kept f32.
    se_w1 = 0.1 * jax.random.normal(ks[4], (outs[2], cse), jnp.float32)
    se_b1 = 0.05 * jax.random.normal(ks[5], (cse,), jnp.float32)
    se_w2 = 0.1 * jax.random.normal(ks[6], (cse, outs[2]), jnp.float32)
    se_b2 = 0.05 * jax.random.normal(ks[7], (outs[2],), jnp.float32)
    se_w1 = jnp.pad(se_w1, ((0, c3p - outs[2]), (0, csep - cse)))
    se_b1 = jnp.pad(se_b1, (0, csep - cse)).reshape(1, csep)
    se_w2 = jnp.pad(se_w2, ((0, csep - cse), (0, c3p - outs[2])))
    se_b2 = jnp.pad(se_b2, (0, c3p - outs[2])).reshape(1, c3p)

    return dict(w1=w1, b1=b1, w2=w2, b2=b2, w3=w3, b3=b3, we=we, be=be,
                se_w1=se_w1, se_b1=se_b1, se_w2=se_w2, se_b2=se_b2)


# ---------------------------------- main ------------------------------------


if __name__ == "__main__":
    # ResNet50-style down block config (small):
    in_channel = 16
    outs = [16, 16, 32]            # outs[2] // 16 == 2 for the SE bottleneck
    kernel_size = [1, 3, 1]
    stride = [1, 2, 1, 2]          # main path downsamples on conv2, extra on its 1x1
    padding = [0, 1, 0]

    key = jax.random.PRNGKey(0)
    kx, kp = jax.random.split(key)
    x = jax.random.normal(kx, (2, in_channel, 16, 16), jnp.float32)  # NCHW
    params = init_params(kp, in_channel, outs, kernel_size)

    @jax.jit
    def fwd(x_in, p):
        return resnet50_down_block(x_in, p, kernel_size, stride, padding, outs[2])

    out = jax.block_until_ready(fwd(x, params))

    assert out.shape == (2, outs[2], 8, 8), out.shape
    assert bool(jnp.all(out >= 0.0)) and bool(jnp.all(jnp.isfinite(out)))
    print("KERNEL_OK")
</pallas_src>

<mosaic_0001>
module attributes {stable_mosaic.version = 11 : i64} {
  func.func @_mm_bias_kernel(%arg0: i32, %arg1: i32, %arg2: i32, %arg3: memref<128x16xbf16, #tpu.memory_space<vmem>>, %arg4: memref<16x128xbf16, #tpu.memory_space<vmem>>, %arg5: memref<1x128xf32, #tpu.memory_space<vmem>>, %arg6: memref<128x128xbf16, #tpu.memory_space<vmem>>, %arg7: memref<128x128xf32, #tpu.memory_space<vmem>>) attributes {dimension_semantics = [#tpu.dimension_semantics<parallel>, #tpu.dimension_semantics<parallel>, #tpu.dimension_semantics<arbitrary>], iteration_bounds = array<i64: 1, 1, 1>, scalar_prefetch = 0 : i64, scratch_operands = 1 : i64, tpu.core_type = #tpu.core_type<tc>, window_params = [{transform_indices = @transform_0, window_bounds = array<i64: 128, 16>}, {transform_indices = @transform_1, window_bounds = array<i64: 16, 128>}, {transform_indices = @transform_2, window_bounds = array<i64: 1, 128>}, {transform_indices = @transform_3, window_bounds = array<i64: 128, 128>}]} {
    %c0_i32 = arith.constant 0 : i32
    %0 = arith.cmpi eq, %arg2, %c0_i32 : i32
    %1 = arith.extui %0 : i1 to i32
    %c0_i32_0 = arith.constant 0 : i32
    %2 = arith.cmpi ne, %1, %c0_i32_0 : i32
    scf.if %2 {
      %cst_10 = arith.constant 0.000000e+00 : f32
      %12 = vector.broadcast %cst_10 : f32 to vector<128x128xf32>
      %c0_11 = arith.constant 0 : index
      %c0_12 = arith.constant 0 : index
      %13 = vector.load %arg7[%c0_11, %c0_12] : memref<128x128xf32, #tpu.memory_space<vmem>>, vector<128x128xf32>
      tpu.vector_store %arg7[%c0_11, %c0_12], %12 {strides = array<i32>} : memref<128x128xf32, #tpu.memory_space<vmem>>, vector<128x128xf32>,
    } else {
    }
    %c0 = arith.constant 0 : index
    %c0_1 = arith.constant 0 : index
    %3 = vector.load %arg7[%c0, %c0_1] : memref<128x128xf32, #tpu.memory_space<vmem>>, vector<128x128xf32>
    %c0_2 = arith.constant 0 : index
    %c0_3 = arith.constant 0 : index
    %4 = vector.load %arg3[%c0_2, %c0_3] : memref<128x16xbf16, #tpu.memory_space<vmem>>, vector<128x16xbf16>
    %c0_4 = arith.constant 0 : index
    %c0_5 = arith.constant 0 : index
    %5 = vector.load %arg4[%c0_4, %c0_5] : memref<16x128xbf16, #tpu.memory_space<vmem>>, vector<16x128xbf16>
    %cst = arith.constant dense<0.000000e+00> : vector<128x128xf32>
    %6 = tpu.matmul %4, %5, %cst {dimension_numbers = #tpu.dot_dimension_numbers<[1], [0], [0], [1], [0, 0, 1, 1], [], []>} : vector<128x16xbf16>, vector<16x128xbf16>, vector<128x128xf32> -> vector<128x128xf32>
    %7 = arith.addf %3, %6 : vector<128x128xf32>
    %c0_6 = arith.constant 0 : index
    %c0_7 = arith.constant 0 : index
    %8 = vector.load %arg7[%c0_6, %c0_7] : memref<128x128xf32, #tpu.memory_space<vmem>>, vector<128x128xf32>
    tpu.vector_store %arg7[%c0_6, %c0_7], %7 {strides = array<i32>} : memref<128x128xf32, #tpu.memory_space<vmem>>, vector<128x128xf32>,
    %c0_i32_8 = arith.constant 0 : i32
    %9 = arith.cmpi eq, %arg2, %c0_i32_8 : i32
    %10 = arith.extui %9 : i1 to i32
    %c0_i32_9 = arith.constant 0 : i32
    %11 = arith.cmpi ne, %10, %c0_i32_9 : i32
    scf.if %11 {
      %c0_10 = arith.constant 0 : index
      %c0_11 = arith.constant 0 : index
      %12 = vector.load %arg7[%c0_10, %c0_11] : memref<128x128xf32, #tpu.memory_space<vmem>>, vector<128x128xf32>
      %c0_12 = arith.constant 0 : index
      %c0_13 = arith.constant 0 : index
      %13 = vector.load %arg5[%c0_12, %c0_13] : memref<1x128xf32, #tpu.memory_space<vmem>>, vector<1x128xf32>
      %14 = vector.broadcast %13 : vector<1x128xf32> to vector<128x128xf32>
      %15 = arith.addf %12, %14 : vector<128x128xf32>
      %16 = arith.truncf %15 : vector<128x128xf32> to vector<128x128xbf16>
      %c0_14 = arith.constant 0 : index
      %c0_15 = arith.constant 0 : index
      %17 = vector.load %arg6[%c0_14, %c0_15] : memref<128x128xbf16, #tpu.memory_space<vmem>>, vector<128x128xbf16>
      tpu.vector_store %arg6[%c0_14, %c0_15], %16 {strides = array<i32>} : memref<128x128xbf16, #tpu.memory_space<vmem>>, vector<128x128xbf16>,
    } else {
    }
    return
  }
  func.func @transform_0(%arg0: i32, %arg1: i32, %arg2: i32) -> (i32, i32) {
    %c0_i32 = arith.constant 0 : i32
    return %arg0, %arg2 : i32, i32
  }
  func.func @transform_1(%arg0: i32, %arg1: i32, %arg2: i32) -> (i32, i32) {
    %c0_i32 = arith.constant 0 : i32
    return %arg2, %arg1 : i32, i32
  }
  func.func @transform_2(%arg0: i32, %arg1: i32, %arg2: i32) -> (i32, i32) {
    %c0_i32 = arith.constant 0 : i32
    %c0_i32_0 = arith.constant 0 : i32
    return %c0_i32, %arg1 : i32, i32
  }
  func.func @transform_3(%arg0: i32, %arg1: i32, %arg2: i32) -> (i32, i32) {
    %c0_i32 = arith.constant 0 : i32
    return %arg0, %arg1 : i32, i32
  }
}

module attributes {stable_mosaic.version = 11 : i64} {
  func.func @_mm_bias_kernel(%arg0: i32, %arg1: i32, %arg2: i32, %arg3: memref<256x16xbf16, #tpu.memory_space<vmem>>, %arg4: memref<16x128xbf16, #tpu.memory_space<vmem>>, %arg5: memref<1x128xf32, #tpu.memory_space<vmem>>, %arg6: memref<256x128xbf16, #tpu.memory_space<vmem>>, %arg7: memref<256x128xf32, #tpu.memory_space<vmem>>) attributes {dimension_semantics = [#tpu.dimension_semantics<parallel>, #tpu.dimension_semantics<parallel>, #tpu.dimension_semantics<arbitrary>], iteration_bounds = array<i64: 2, 1, 1>, scalar_prefetch = 0 : i64, scratch_operands = 1 : i64, tpu.core_type = #tpu.core_type<tc>, window_params = [{transform_indices = @transform_0, window_bounds = array<i64: 256, 16>}, {transform_indices = @transform_1, window_bounds = array<i64: 16, 128>}, {transform_indices = @transform_2, window_bounds = array<i64: 1, 128>}, {transform_indices = @transform_3, window_bounds = array<i64: 256, 128>}]} {
    %c0_i32 = arith.constant 0 : i32
    %0 = arith.cmpi eq, %arg2, %c0_i32 : i32
    %1 = arith.extui %0 : i1 to i32
    %c0_i32_0 = arith.constant 0 : i32
    %2 = arith.cmpi ne, %1, %c0_i32_0 : i32
    scf.if %2 {
      %cst_10 = arith.constant 0.000000e+00 : f32
      %12 = vector.broadcast %cst_10 : f32 to vector<256x128xf32>
      %c0_11 = arith.constant 0 : index
      %c0_12 = arith.constant 0 : index
      %13 = vector.load %arg7[%c0_11, %c0_12] : memref<256x128xf32, #tpu.memory_space<vmem>>, vector<256x128xf32>
      tpu.vector_store %arg7[%c0_11, %c0_12], %12 {strides = array<i32>} : memref<256x128xf32, #tpu.memory_space<vmem>>, vector<256x128xf32>,
    } else {
    }
    %c0 = arith.constant 0 : index
    %c0_1 = arith.constant 0 : index
    %3 = vector.load %arg7[%c0, %c0_1] : memref<256x128xf32, #tpu.memory_space<vmem>>, vector<256x128xf32>
    %c0_2 = arith.constant 0 : index
    %c0_3 = arith.constant 0 : index
    %4 = vector.load %arg3[%c0_2, %c0_3] : memref<256x16xbf16, #tpu.memory_space<vmem>>, vector<256x16xbf16>
    %c0_4 = arith.constant 0 : index
    %c0_5 = arith.constant 0 : index
    %5 = vector.load %arg4[%c0_4, %c0_5] : memref<16x128xbf16, #tpu.memory_space<vmem>>, vector<16x128xbf16>
    %cst = arith.constant dense<0.000000e+00> : vector<256x128xf32>
    %6 = tpu.matmul %4, %5, %cst {dimension_numbers = #tpu.dot_dimension_numbers<[1], [0], [0], [1], [0, 0, 1, 1], [], []>} : vector<256x16xbf16>, vector<16x128xbf16>, vector<256x128xf32> -> vector<256x128xf32>
    %7 = arith.addf %3, %6 : vector<256x128xf32>
    %c0_6 = arith.constant 0 : index
    %c0_7 = arith.constant 0 : index
    %8 = vector.load %arg7[%c0_6, %c0_7] : memref<256x128xf32, #tpu.memory_space<vmem>>, vector<256x128xf32>
    tpu.vector_store %arg7[%c0_6, %c0_7], %7 {strides = array<i32>} : memref<256x128xf32, #tpu.memory_space<vmem>>, vector<256x128xf32>,
    %c0_i32_8 = arith.constant 0 : i32
    %9 = arith.cmpi eq, %arg2, %c0_i32_8 : i32
    %10 = arith.extui %9 : i1 to i32
    %c0_i32_9 = arith.constant 0 : i32
    %11 = arith.cmpi ne, %10, %c0_i32_9 : i32
    scf.if %11 {
      %c0_10 = arith.constant 0 : index
      %c0_11 = arith.constant 0 : index
      %12 = vector.load %arg7[%c0_10, %c0_11] : memref<256x128xf32, #tpu.memory_space<vmem>>, vector<256x128xf32>
      %c0_12 = arith.constant 0 : index
      %c0_13 = arith.constant 0 : index
      %13 = vector.load %arg5[%c0_12, %c0_13] : memref<1x128xf32, #tpu.memory_space<vmem>>, vector<1x128xf32>
      %14 = vector.broadcast %13 : vector<1x128xf32> to vector<256x128xf32>
      %15 = arith.addf %12, %14 : vector<256x128xf32>
      %cst_14 = arith.constant 0.000000e+00 : f32
      %16 = vector.broadcast %cst_14 : f32 to vector<256x128xf32>
      %17 = arith.maximumf %15, %16 : vector<256x128xf32>
      %18 = arith.truncf %17 : vector<256x128xf32> to vector<256x128xbf16>
      %c0_15 = arith.constant 0 : index
      %c0_16 = arith.constant 0 : index
      %19 = vector.load %arg6[%c0_15, %c0_16] : memref<256x128xbf16, #tpu.memory_space<vmem>>, vector<256x128xbf16>
      tpu.vector_store %arg6[%c0_15, %c0_16], %18 {strides = array<i32>} : memref<256x128xbf16, #tpu.memory_space<vmem>>, vector<256x128xbf16>,
    } else {
    }
    return
  }
  func.func @transform_0(%arg0: i32, %arg1: i32, %arg2: i32) -> (i32, i32) {
    %c0_i32 = arith.constant 0 : i32
    return %arg0, %arg2 : i32, i32
  }
  func.func @transform_1(%arg0: i32, %arg1: i32, %arg2: i32) -> (i32, i32) {
    %c0_i32 = arith.constant 0 : i32
    return %arg2, %arg1 : i32, i32
  }
  func.func @transform_2(%arg0: i32, %arg1: i32, %arg2: i32) -> (i32, i32) {
    %c0_i32 = arith.constant 0 : i32
    %c0_i32_0 = arith.constant 0 : i32
    return %c0_i32, %arg1 : i32, i32
  }
  func.func @transform_3(%arg0: i32, %arg1: i32, %arg2: i32) -> (i32, i32) {
    %c0_i32 = arith.constant 0 : i32
    return %arg0, %arg1 : i32, i32
  }
}

module attributes {stable_mosaic.version = 11 : i64} {
  func.func @_conv_taps_kernel(%arg0: i32, %arg1: i32, %arg2: memref<1x36x9x128xbf16, #tpu.memory_space<vmem>>, %arg3: memref<9x128x128xbf16, #tpu.memory_space<vmem>>, %arg4: memref<1x128xf32, #tpu.memory_space<vmem>>, %arg5: memref<1x64x128xbf16, #tpu.memory_space<vmem>>) attributes {dimension_semantics = [#tpu.dimension_semantics<parallel>, #tpu.dimension_semantics<parallel>], iteration_bounds = array<i64: 2, 1>, scalar_prefetch = 0 : i64, scratch_operands = 0 : i64, tpu.core_type = #tpu.core_type<tc>, window_params = [{transform_indices = @transform_0, window_bounds = array<i64: 1, 36, 9, 128>}, {transform_indices = @transform_1, window_bounds = array<i64: 9, 128, 128>}, {transform_indices = @transform_2, window_bounds = array<i64: 1, 128>}, {transform_indices = @transform_3, window_bounds = array<i64: 1, 64, 128>}]} {
    %cst = arith.constant 0.000000e+00 : f32
    %0 = vector.broadcast %cst : f32 to vector<64x128xf32>
    %c0 = arith.constant 0 : index
    %c0_0 = arith.constant 0 : index
    %c0_1 = arith.constant 0 : index
    %c0_2 = arith.constant 0 : index
    %1 = vector.load %arg2[%c0, %c0_0, %c0_1, %c0_2] : memref<1x36x9x128xbf16, #tpu.memory_space<vmem>>, vector<1x8x8x128xbf16>
    %2 = vector.shape_cast %1 : vector<1x8x8x128xbf16> to vector<8x8x128xbf16>
    %3 = vector.shape_cast %2 : vector<8x8x128xbf16> to vector<64x128xbf16>
    %c0_3 = arith.constant 0 : index
    %c0_4 = arith.constant 0 : index
    %c0_5 = arith.constant 0 : index
    %4 = vector.load %arg3[%c0_3, %c0_4, %c0_5] : memref<9x128x128xbf16, #tpu.memory_space<vmem>>, vector<1x128x128xbf16>
    %5 = vector.shape_cast %4 : vector<1x128x128xbf16> to vector<128x128xbf16>
    %cst_6 = arith.constant dense<0.000000e+00> : vector<64x128xf32>
    %6 = tpu.matmul %3, %5, %cst_6 {dimension_numbers = #tpu.dot_dimension_numbers<[1], [0], [0], [1], [0, 0, 1, 1], [], []>} : vector<64x128xbf16>, vector<128x128xbf16>, vector<64x128xf32> -> vector<64x128xf32>
    %7 = arith.addf %0, %6 : vector<64x128xf32>
    %c0_7 = arith.constant 0 : index
    %c9 = arith.constant 9 : index
    %c0_8 = arith.constant 0 : index
    %c0_9 = arith.constant 0 : index
    %8 = vector.load %arg2[%c0_7, %c9, %c0_8, %c0_9] : memref<1x36x9x128xbf16, #tpu.memory_space<vmem>>, vector<1x8x8x128xbf16>
    %9 = vector.shape_cast %8 : vector<1x8x8x128xbf16> to vector<8x8x128xbf16>
    %10 = vector.shape_cast %9 : vector<8x8x128xbf16> to vector<64x128xbf16>
    %c1 = arith.constant 1 : index
    %c0_10 = arith.constant 0 : index
    %c0_11 = arith.constant 0 : index
    %11 = vector.load %arg3[%c1, %c0_10, %c0_11] : memref<9x128x128xbf16, #tpu.memory_space<vmem>>, vector<1x128x128xbf16>
    %12 = vector.shape_cast %11 : vector<1x128x128xbf16> to vector<128x128xbf16>
    %cst_12 = arith.constant dense<0.000000e+00> : vector<64x128xf32>
    %13 = tpu.matmul %10, %12, %cst_12 {dimension_numbers = #tpu.dot_dimension_numbers<[1], [0], [0], [1], [0, 0, 1, 1], [], []>} : vector<64x128xbf16>, vector<128x128xbf16>, vector<64x128xf32> -> vector<64x128xf32>
    %14 = arith.addf %7, %13 : vector<64x128xf32>
    %c0_13 = arith.constant 0 : index
    %c0_14 = arith.constant 0 : index
    %c1_15 = arith.constant 1 : index
    %c0_16 = arith.constant 0 : index
    %15 = vector.load %arg2[%c0_13, %c0_14, %c1_15, %c0_16] : memref<1x36x9x128xbf16, #tpu.memory_space<vmem>>, vector<1x8x8x128xbf16>
    %16 = vector.shape_cast %15 : vector<1x8x8x128xbf16> to vector<8x8x128xbf16>
    %17 = vector.shape_cast %16 : vector<8x8x128xbf16> to vector<64x128xbf16>
    %c2 = arith.constant 2 : index
    %c0_17 = arith.constant 0 : index
    %c0_18 = arith.constant 0 : index
    %18 = vector.load %arg3[%c2, %c0_17, %c0_18] : memref<9x128x128xbf16, #tpu.memory_space<vmem>>, vector<1x128x128xbf16>
    %19 = vector.shape_cast %18 : vector<1x128x128xbf16> to vector<128x128xbf16>
    %cst_19 = arith.constant dense<0.000000e+00> : vector<64x128xf32>
    %20 = tpu.matmul %17, %19, %cst_19 {dimension_numbers = #tpu.dot_dimension_numbers<[1], [0], [0], [1], [0, 0, 1, 1], [], []>} : vector<64x128xbf16>, vector<128x128xbf16>, vector<64x128xf32> -> vector<64x128xf32>
    %21 = arith.addf %14, %20 : vector<64x128xf32>
    %c0_20 = arith.constant 0 : index
    %c18 = arith.constant 18 : index
    %c0_21 = arith.constant 0 : index
    %c0_22 = arith.constant 0 : index
    %22 = vector.load %arg2[%c0_20, %c18, %c0_21, %c0_22] : memref<1x36x9x128xbf16, #tpu.memory_space<vmem>>, vector<1x8x8x128xbf16>
    %23 = vector.shape_cast %22 : vector<1x8x8x128xbf16> to vector<8x8x128xbf16>
    %24 = vector.shape_cast %23 : vector<8x8x128xbf16> to vector<64x128xbf16>
    %c3 = arith.constant 3 : index
    %c0_23 = arith.constant 0 : index
    %c0_24 = arith.constant 0 : index
    %25 = vector.load %arg3[%c3, %c0_23, %c0_24] : memref<9x128x128xbf16, #tpu.memory_space<vmem>>, vector<1x128x128xbf16>
    %26 = vector.shape_cast %25 : vector<1x128x128xbf16> to vector<128x128xbf16>
    %cst_25 = arith.constant dense<0.000000e+00> : vector<64x128xf32>
    %27 = tpu.matmul %24, %26, %cst_25 {dimension_numbers = #tpu.dot_dimension_numbers<[1], [0], [0], [1], [0, 0, 1, 1], [], []>} : vector<64x128xbf16>, vector<128x128xbf16>, vector<64x128xf32> -> vector<64x128xf32>
    %28 = arith.addf %21, %27 : vector<64x128xf32>
    %c0_26 = arith.constant 0 : index
    %c27 = arith.constant 27 : index
    %c0_27 = arith.constant 0 : index
    %c0_28 = arith.constant 0 : index
    %29 = vector.load %arg2[%c0_26, %c27, %c0_27, %c0_28] : memref<1x36x9x128xbf16, #tpu.memory_space<vmem>>, vector<1x8x8x128xbf16>
    %30 = vector.shape_cast %29 : vector<1x8x8x128xbf16> to vector<8x8x128xbf16>
    %31 = vector.shape_cast %30 : vector<8x8x128xbf16> to vector<64x128xbf16>
    %c4 = arith.constant 4 : index
    %c0_29 = arith.constant 0 : index
    %c0_30 = arith.constant 0 : index
    %32 = vector.load %arg3[%c4, %c0_29, %c0_30] : memref<9x128x128xbf16, #tpu.memory_space<vmem>>, vector<1x128x128xbf16>
    %33 = vector.shape_cast %32 : vector<1x128x128xbf16> to vector<128x128xbf16>
    %cst_31 = arith.constant dense<0.000000e+00> : vector<64x128xf32>
    %34 = tpu.matmul %31, %33, %cst_31 {dimension_numbers = #tpu.dot_dimension_numbers<[1], [0], [0], [1], [0, 0, 1, 1], [], []>} : vector<64x128xbf16>, vector<128x128xbf16>, vector<64x128xf32> -> vector<64x128xf32>
    %35 = arith.addf %28, %34 : vector<64x128xf32>
    %c0_32 = arith.constant 0 : index
    %c18_33 = arith.constant 18 : index
    %c1_34 = arith.constant 1 : index
    %c0_35 = arith.constant 0 : index
    %36 = vector.load %arg2[%c0_32, %c18_33, %c1_34, %c0_35] : memref<1x36x9x128xbf16, #tpu.memory_space<vmem>>, vector<1x8x8x128xbf16>
    %37 = vector.shape_cast %36 : vector<1x8x8x128xbf16> to vector<8x8x128xbf16>
    %38 = vector.shape_cast %37 : vector<8x8x128xbf16> to vector<64x128xbf16>
    %c5 = arith.constant 5 : index
    %c0_36 = arith.constant 0 : index
    %c0_37 = arith.constant 0 : index
    %39 = vector.load %arg3[%c5, %c0_36, %c0_37] : memref<9x128x128xbf16, #tpu.memory_space<vmem>>, vector<1x128x128xbf16>
    %40 = vector.shape_cast %39 : vector<1x128x128xbf16> to vector<128x128xbf16>
    %cst_38 = arith.constant dense<0.000000e+00> : vector<64x128xf32>
    %41 = tpu.matmul %38, %40, %cst_38 {dimension_numbers = #tpu.dot_dimension_numbers<[1], [0], [0], [1], [0, 0, 1, 1], [], []>} : vector<64x128xbf16>, vector<128x128xbf16>, vector<64x128xf32> -> vector<64x128xf32>
    %42 = arith.addf %35, %41 : vector<64x128xf32>
    %c0_39 = arith.constant 0 : index
    %c1_40 = arith.constant 1 : index
    %c0_41 = arith.constant 0 : index
    %c0_42 = arith.constant 0 : index
    %43 = vector.load %arg2[%c0_39, %c1_40, %c0_41, %c0_42] : memref<1x36x9x128xbf16, #tpu.memory_space<vmem>>, vector<1x8x8x128xbf16>
    %44 = vector.shape_cast %43 : vector<1x8x8x128xbf16> to vector<8x8x128xbf16>
    %45 = vector.shape_cast %44 : vector<8x8x128xbf16> to vector<64x128xbf16>
    %c6 = arith.constant 6 : index
    %c0_43 = arith.constant 0 : index
    %c0_44 = arith.constant 0 : index
    %46 = vector.load %arg3[%c6, %c0_43, %c0_44] : memref<9x128x128xbf16, #tpu.memory_space<vmem>>, vector<1x128x128xbf16>
    %47 = vector.shape_cast %46 : vector<1x128x128xbf16> to vector<128x128xbf16>
    %cst_45 = arith.constant dense<0.000000e+00> : vector<64x128xf32>
    %48 = tpu.matmul %45, %47, %cst_45 {dimension_numbers = #tpu.dot_dimension_numbers<[1], [0], [0], [1], [0, 0, 1, 1], [], []>} : vector<64x128xbf16>, vector<128x128xbf16>, vector<64x128xf32> -> vector<64x128xf32>
    %49 = arith.addf %42, %48 : vector<64x128xf32>
    %c0_46 = arith.constant 0 : index
    %c10 = arith.constant 10 : index
    %c0_47 = arith.constant 0 : index
    %c0_48 = arith.constant 0 : index
    %50 = vector.load %arg2[%c0_46, %c10, %c0_47, %c0_48] : memref<1x36x9x128xbf16, #tpu.memory_space<vmem>>, vector<1x8x8x128xbf16>
    %51 = vector.shape_cast %50 : vector<1x8x8x128xbf16> to vector<8x8x128xbf16>
    %52 = vector.shape_cast %51 : vector<8x8x128xbf16> to vector<64x128xbf16>
    %c7 = arith.constant 7 : index
    %c0_49 = arith.constant 0 : index
    %c0_50 = arith.constant 0 : index
    %53 = vector.load %arg3[%c7, %c0_49, %c0_50] : memref<9x128x128xbf16, #tpu.memory_space<vmem>>, vector<1x128x128xbf16>
    %54 = vector.shape_cast %53 : vector<1x128x128xbf16> to vector<128x128xbf16>
    %cst_51 = arith.constant dense<0.000000e+00> : vector<64x128xf32>
    %55 = tpu.matmul %52, %54, %cst_51 {dimension_numbers = #tpu.dot_dimension_numbers<[1], [0], [0], [1], [0, 0, 1, 1], [], []>} : vector<64x128xbf16>, vector<128x128xbf16>, vector<64x128xf32> -> vector<64x128xf32>
    %56 = arith.addf %49, %55 : vector<64x128xf32>
    %c0_52 = arith.constant 0 : index
    %c1_53 = arith.constant 1 : index
    %c1_54 = arith.constant 1 : index
    %c0_55 = arith.constant 0 : index
    %57 = vector.load %arg2[%c0_52, %c1_53, %c1_54, %c0_55] : memref<1x36x9x128xbf16, #tpu.memory_space<vmem>>, vector<1x8x8x128xbf16>
    %58 = vector.shape_cast %57 : vector<1x8x8x128xbf16> to vector<8x8x128xbf16>
    %59 = vector.shape_cast %58 : vector<8x8x128xbf16> to vector<64x128xbf16>
    %c8 = arith.constant 8 : index
    %c0_56 = arith.constant 0 : index
    %c0_57 = arith.constant 0 : index
    %60 = vector.load %arg3[%c8, %c0_56, %c0_57] : memref<9x128x128xbf16, #tpu.memory_space<vmem>>, vector<1x128x128xbf16>
    %61 = vector.shape_cast %60 : vector<1x128x128xbf16> to vector<128x128xbf16>
    %cst_58 = arith.constant dense<0.000000e+00> : vector<64x128xf32>
    %62 = tpu.matmul %59, %61, %cst_58 {dimension_numbers = #tpu.dot_dimension_numbers<[1], [0], [0], [1], [0, 0, 1, 1], [], []>} : vector<64x128xbf16>, vector<128x128xbf16>, vector<64x128xf32> -> vector<64x128xf32>
    %63 = arith.addf %56, %62 : vector<64x128xf32>
    %c0_59 = arith.constant 0 : index
    %c0_60 = arith.constant 0 : index
    %64 = vector.load %arg4[%c0_59, %c0_60] : memref<1x128xf32, #tpu.memory_space<vmem>>, vector<1x128xf32>
    %65 = vector.broadcast %64 : vector<1x128xf32> to vector<64x128xf32>
    %66 = arith.addf %63, %65 : vector<64x128xf32>
    %cst_61 = arith.constant 0.000000e+00 : f32
    %67 = vector.broadcast %cst_61 : f32 to vector<64x128xf32>
    %68 = arith.maximumf %66, %67 : vector<64x128xf32>
    %69 = arith.truncf %68 : vector<64x128xf32> to vector<64x128xbf16>
    %c0_62 = arith.constant 0 : index
    %c0_63 = arith.constant 0 : index
    %c0_64 = arith.constant 0 : index
    %70 = vector.load %arg5[%c0_62, %c0_63, %c0_64] : memref<1x64x128xbf16, #tpu.memory_space<vmem>>, vector<1x64x128xbf16>
    %71 = vector.shape_cast %70 : vector<1x64x128xbf16> to vector<64x128xbf16>
    %72 = vector.shape_cast %69 : vector<64x128xbf16> to vector<1x64x128xbf16>
    tpu.vector_store %arg5[%c0_62, %c0_63, %c0_64], %72 {strides = array<i32>} : memref<1x64x128xbf16, #tpu.memory_space<vmem>>, vector<1x64x128xbf16>,
    return
  }
  func.func @transform_0(%arg0: i32, %arg1: i32) -> (i32, i32, i32, i32) {
    %c0_i32 = arith.constant 0 : i32
    %c0_i32_0 = arith.constant 0 : i32
    %c0_i32_1 = arith.constant 0 : i32
    %c0_i32_2 = arith.constant 0 : i32
    return %arg0, %c0_i32, %c0_i32_0, %c0_i32_1 : i32, i32, i32, i32
  }
  func.func @transform_1(%arg0: i32, %arg1: i32) -> (i32, i32, i32) {
    %c0_i32 = arith.constant 0 : i32
    %c0_i32_0 = arith.constant 0 : i32
    %c0_i32_1 = arith.constant 0 : i32
    return %c0_i32, %c0_i32_0, %arg1 : i32, i32, i32
  }
  func.func @transform_2(%arg0: i32, %arg1: i32) -> (i32, i32) {
    %c0_i32 = arith.constant 0 : i32
    %c0_i32_0 = arith.constant 0 : i32
    return %c0_i32, %arg1 : i32, i32
  }
  func.func @transform_3(%arg0: i32, %arg1: i32) -> (i32, i32, i32) {
    %c0_i32 = arith.constant 0 : i32
    %c0_i32_0 = arith.constant 0 : i32
    return %arg0, %c0_i32, %arg1 : i32, i32, i32
  }
}

module attributes {stable_mosaic.version = 11 : i64} {
  func.func @_conv3_se_kernel(%arg0: i32, %arg1: memref<1x64x128xbf16, #tpu.memory_space<vmem>>, %arg2: memref<1x64x128xbf16, #tpu.memory_space<vmem>>, %arg3: memref<128x128xbf16, #tpu.memory_space<vmem>>, %arg4: memref<1x128xf32, #tpu.memory_space<vmem>>, %arg5: memref<128x128xf32, #tpu.memory_space<vmem>>, %arg6: memref<1x128xf32, #tpu.memory_space<vmem>>, %arg7: memref<128x128xf32, #tpu.memory_space<vmem>>, %arg8: memref<1x128xf32, #tpu.memory_space<vmem>>, %arg9: memref<1x64x128xf32, #tpu.memory_space<vmem>>) attributes {dimension_semantics = [#tpu.dimension_semantics<parallel>], iteration_bounds = array<i64: 2>, scalar_prefetch = 0 : i64, scratch_operands = 0 : i64, tpu.core_type = #tpu.core_type<tc>, window_params = [{transform_indices = @transform_0, window_bounds = array<i64: 1, 64, 128>}, {transform_indices = @transform_1, window_bounds = array<i64: 1, 64, 128>}, {pipeline_mode = #tpu.pipeline_mode<synchronous>, transform_indices = @transform_2, window_bounds = array<i64: 128, 128>}, {pipeline_mode = #tpu.pipeline_mode<synchronous>, transform_indices = @transform_3, window_bounds = array<i64: 1, 128>}, {pipeline_mode = #tpu.pipeline_mode<synchronous>, transform_indices = @transform_4, window_bounds = array<i64: 128, 128>}, {pipeline_mode = #tpu.pipeline_mode<synchronous>, transform_indices = @transform_5, window_bounds = array<i64: 1, 128>}, {pipeline_mode = #tpu.pipeline_mode<synchronous>, transform_indices = @transform_6, window_bounds = array<i64: 128, 128>}, {pipeline_mode = #tpu.pipeline_mode<synchronous>, transform_indices = @transform_7, window_bounds = array<i64: 1, 128>}, {transform_indices = @transform_8, window_bounds = array<i64: 1, 64, 128>}]} {
    %c0 = arith.constant 0 : index
    %c0_0 = arith.constant 0 : index
    %c0_1 = arith.constant 0 : index
    %0 = vector.load %arg1[%c0, %c0_0, %c0_1] : memref<1x64x128xbf16, #tpu.memory_space<vmem>>, vector<1x64x128xbf16>
    %1 = vector.shape_cast %0 : vector<1x64x128xbf16> to vector<64x128xbf16>
    %c0_2 = arith.constant 0 : index
    %c0_3 = arith.constant 0 : index
    %2 = vector.load %arg3[%c0_2, %c0_3] : memref<128x128xbf16, #tpu.memory_space<vmem>>, vector<128x128xbf16>
    %cst = arith.constant dense<0.000000e+00> : vector<64x128xf32>
    %3 = tpu.matmul %1, %2, %cst {dimension_numbers = #tpu.dot_dimension_numbers<[1], [0], [0], [1], [0, 0, 1, 1], [], []>} : vector<64x128xbf16>, vector<128x128xbf16>, vector<64x128xf32> -> vector<64x128xf32>
    %c0_4 = arith.constant 0 : index
    %c0_5 = arith.constant 0 : index
    %4 = vector.load %arg4[%c0_4, %c0_5] : memref<1x128xf32, #tpu.memory_space<vmem>>, vector<1x128xf32>
    %5 = vector.broadcast %4 : vector<1x128xf32> to vector<64x128xf32>
    %6 = arith.addf %3, %5 : vector<64x128xf32>
    %cst_6 = arith.constant dense<0.000000e+00> : vector<128xf32>
    %7 = vector.multi_reduction <add>, %6, %cst_6 [0] : vector<64x128xf32> to vector<128xf32>
    %8 = vector.shape_cast %7 : vector<128xf32> to vector<1x128xf32>
    %cst_7 = arith.constant 1.562500e-02 : f32
    %9 = vector.broadcast %cst_7 : f32 to vector<1x128xf32>
    %10 = arith.mulf %8, %9 : vector<1x128xf32>
    %c0_8 = arith.constant 0 : index
    %c0_9 = arith.constant 0 : index
    %11 = vector.load %arg5[%c0_8, %c0_9] : memref<128x128xf32, #tpu.memory_space<vmem>>, vector<128x128xf32>
    %cst_10 = arith.constant dense<0.000000e+00> : vector<1x128xf32>
    %12 = tpu.matmul %10, %11, %cst_10 {dimension_numbers = #tpu.dot_dimension_numbers<[1], [0], [0], [1], [0, 0, 1, 1], [], []>} : vector<1x128xf32>, vector<128x128xf32>, vector<1x128xf32> -> vector<1x128xf32>
    %c0_11 = arith.constant 0 : index
    %c0_12 = arith.constant 0 : index
    %13 = vector.load %arg6[%c0_11, %c0_12] : memref<1x128xf32, #tpu.memory_space<vmem>>, vector<1x128xf32>
    %14 = arith.addf %12, %13 : vector<1x128xf32>
    %cst_13 = arith.constant 0.000000e+00 : f32
    %15 = vector.broadcast %cst_13 : f32 to vector<1x128xf32>
    %16 = arith.maximumf %14, %15 : vector<1x128xf32>
    %c0_14 = arith.constant 0 : index
    %c0_15 = arith.constant 0 : index
    %17 = vector.load %arg7[%c0_14, %c0_15] : memref<128x128xf32, #tpu.memory_space<vmem>>, vector<128x128xf32>
    %cst_16 = arith.constant dense<0.000000e+00> : vector<1x128xf32>
    %18 = tpu.matmul %16, %17, %cst_16 {dimension_numbers = #tpu.dot_dimension_numbers<[1], [0], [0], [1], [0, 0, 1, 1], [], []>} : vector<1x128xf32>, vector<128x128xf32>, vector<1x128xf32> -> vector<1x128xf32>
    %c0_17 = arith.constant 0 : index
    %c0_18 = arith.constant 0 : index
    %19 = vector.load %arg8[%c0_17, %c0_18] : memref<1x128xf32, #tpu.memory_space<vmem>>, vector<1x128xf32>
    %20 = arith.addf %18, %19 : vector<1x128xf32>
    %cst_19 = arith.constant 0.000000e+00 : f32
    %21 = vector.broadcast %cst_19 : f32 to vector<1x128xf32>
    %22 = arith.subf %21, %20 : vector<1x128xf32>
    %23 = math.exp %22 : vector<1x128xf32>
    %cst_20 = arith.constant 1.000000e+00 : f32
    %24 = vector.broadcast %cst_20 : f32 to vector<1x128xf32>
    %25 = arith.addf %24, %23 : vector<1x128xf32>
    %26 = tpu.reciprocal %25 {approx = true} : vector<1x128xf32> -> vector<1x128xf32>
    %c0_21 = arith.constant 0 : index
    %c0_22 = arith.constant 0 : index
    %c0_23 = arith.constant 0 : index
    %27 = vector.load %arg2[%c0_21, %c0_22, %c0_23] : memref<1x64x128xbf16, #tpu.memory_space<vmem>>, vector<1x64x128xbf16>
    %28 = vector.shape_cast %27 : vector<1x64x128xbf16> to vector<64x128xbf16>
    %29 = arith.extf %28 : vector<64x128xbf16> to vector<64x128xf32>
    %30 = vector.broadcast %26 : vector<1x128xf32> to vector<64x128xf32>
    %31 = arith.mulf %6, %30 : vector<64x128xf32>
    %32 = arith.addf %29, %31 : vector<64x128xf32>
    %cst_24 = arith.constant 0.000000e+00 : f32
    %33 = vector.broadcast %cst_24 : f32 to vector<64x128xf32>
    %34 = arith.maximumf %32, %33 : vector<64x128xf32>
    %c0_25 = arith.constant 0 : index
    %c0_26 = arith.constant 0 : index
    %c0_27 = arith.constant 0 : index
    %35 = vector.load %arg9[%c0_25, %c0_26, %c0_27] : memref<1x64x128xf32, #tpu.memory_space<vmem>>, vector<1x64x128xf32>
    %36 = vector.shape_cast %35 : vector<1x64x128xf32> to vector<64x128xf32>
    %37 = vector.shape_cast %34 : vector<64x128xf32> to vector<1x64x128xf32>
    tpu.vector_store %arg9[%c0_25, %c0_26, %c0_27], %37 {strides = array<i32>} : memref<1x64x128xf32, #tpu.memory_space<vmem>>, vector<1x64x128xf32>,
    return
  }
  func.func @transform_0(%arg0: i32) -> (i32, i32, i32) {
    %c0_i32 = arith.constant 0 : i32
    %c0_i32_0 = arith.constant 0 : i32
    %c0_i32_1 = arith.constant 0 : i32
    return %arg0, %c0_i32, %c0_i32_0 : i32, i32, i32
  }
  func.func @transform_1(%arg0: i32) -> (i32, i32, i32) {
    %c0_i32 = arith.constant 0 : i32
    %c0_i32_0 = arith.constant 0 : i32
    %c0_i32_1 = arith.constant 0 : i32
    return %arg0, %c0_i32, %c0_i32_0 : i32, i32, i32
  }
  func.func @transform_2(%arg0: i32) -> (i32, i32) {
    %c0_i32 = arith.constant 0 : i32
    %c0_i32_0 = arith.constant 0 : i32
    %c0_i32_1 = arith.constant 0 : i32
    return %c0_i32, %c0_i32_0 : i32, i32
  }
  func.func @transform_3(%arg0: i32) -> (i32, i32) {
    %c0_i32 = arith.constant 0 : i32
    %c0_i32_0 = arith.constant 0 : i32
    %c0_i32_1 = arith.constant 0 : i32
    return %c0_i32, %c0_i32_0 : i32, i32
  }
  func.func @transform_4(%arg0: i32) -> (i32, i32) {
    %c0_i32 = arith.constant 0 : i32
    %c0_i32_0 = arith.constant 0 : i32
    %c0_i32_1 = arith.constant 0 : i32
    return %c0_i32, %c0_i32_0 : i32, i32
  }
  func.func @transform_5(%arg0: i32) -> (i32, i32) {
    %c0_i32 = arith.constant 0 : i32
    %c0_i32_0 = arith.constant 0 : i32
    %c0_i32_1 = arith.constant 0 : i32
    return %c0_i32, %c0_i32_0 : i32, i32
  }
  func.func @transform_6(%arg0: i32) -> (i32, i32) {
    %c0_i32 = arith.constant 0 : i32
    %c0_i32_0 = arith.constant 0 : i32
    %c0_i32_1 = arith.constant 0 : i32
    return %c0_i32, %c0_i32_0 : i32, i32
  }
  func.func @transform_7(%arg0: i32) -> (i32, i32) {
    %c0_i32 = arith.constant 0 : i32
    %c0_i32_0 = arith.constant 0 : i32
    %c0_i32_1 = arith.constant 0 : i32
    return %c0_i32, %c0_i32_0 : i32, i32
  }
  func.func @transform_8(%arg0: i32) -> (i32, i32, i32) {
    %c0_i32 = arith.constant 0 : i32
    %c0_i32_0 = arith.constant 0 : i32
    %c0_i32_1 = arith.constant 0 : i32
    return %arg0, %c0_i32, %c0_i32_0 : i32, i32, i32
  }
}

</mosaic_0001>

<bundles_post_ra>
// kernel: fwd.4
= control target key start
LH: loop header
LB: loop body
LE: loop exit
PB: predicated region body
PF: predicated region fallthrough
CT: control target
= control target key end

     0   :  { %vm115_vm0 = vcmask 130048   ;;  %s612_s1 = inlined_call_operand.vmem [shape: bf16[16,128], index: 1, kind: input, shape index: {}]   ;;  %s613_s0 = inlined_call_operand.vmem [shape: bf16[128,16], index: 0, kind: input, shape index: {}]   ;;  %s614_s2 = inlined_call_operand.vmem [shape: f32[1,128], index: 2, kind: input, shape index: {}]   ;;  %s615_s3 = inlined_call_operand.vmem [shape: bf16[128,128], index: 3, kind: output, shape index: {}]  }
   0x1   :  { %v521_v0 = vld [vmem:[%s612_s1] sm:$0xff]   ;;  %v524_v3 = vld [vmem:[%s613_s0 + $0x8] sm:$0xff]   ;;  %v526_v5 = vld [vmem:[%s613_s0 + $0x10] sm:$0xff]  }
   0x2   :  { %v522_v1 = vld [vmem:[%s613_s0] sm:$0xff]   ;;  %501 = vmatprep.subr.bf16.mxu0 %v521_v0  ;;  %519 = vmatprep.subr.bf16.mxu1 %v521_v0  ;;  %v525_v4 = vld [vmem:[%s613_s0 + $0x28] sm:$0xff]   ;;  %v527_v6 = vld [vmem:[%s613_s0 + $0x30] sm:$0xff]  }
   0x3   :  { %v523_v2 = vld [vmem:[%s613_s0 + $0x20] sm:$0xff]   ;;  %502 = vmatpush3.bf16.msra.mxu0 %v521_v0  ;;  %520 = vmatpush3.bf16.msra.mxu1 %v521_v0  ;;  %v528_v7 = vld [vmem:[%s613_s0 + $0x18] sm:$0xff]  }
   0x4   :  { %503 = vmatprep.mubr.msk.bf16.mxu0 %vm115_vm0, %v522_v1  ;;  %511 = vmatprep.mubr.msk.bf16.mxu1 %vm115_vm0, %v523_v2  ;;  %v529_v8 = vld [vmem:[%s613_s0 + $0x38] sm:$0xff]   ;;  %v412_v10 = vld [vmem:[%s614_s2] ss:$0 sm:$0xff] }
   0x6   :  { %504 = vmatmul.mubr.msk.bf16.vlgmr.msra.gmra.mrb[0].mxu0 %vm115_vm0, %v524_v3  ;;  %512 = vmatmul.mubr.msk.bf16.vlgmr.msra.gmra.mrb[0].mxu1 %vm115_vm0, %v525_v4 }
   0x7   :  { %507 = vmatprep.mubr.msk.bf16.mxu0 %vm115_vm0, %v526_v5  ;;  %515 = vmatprep.mubr.msk.bf16.mxu1 %vm115_vm0, %v527_v6 }
   0xe   :  { %508 = vmatmul.mubr.msk.bf16.gmra.mrb[4].mxu0 %vm115_vm0, %v528_v7  ;;  %516 = vmatmul.mubr.msk.bf16.gmra.mrb[4].mxu1 %vm115_vm0, %v529_v8 }
  0xd9   :  { %v505_v9 = vpop.f32.mrb[0].mxu0  ;;  %v513_v11 = vpop.f32.mrb[0].mxu1 }
  0xda   :  { %v174_v12 = vpop.f32.mrb[1].mxu0  ;;  %v206_v13 = vpop.f32.mrb[1].mxu1  ;;  %v297_v16 = vadd.f32 %v505_v9, %v412_v10  ;;  %v305_v17 = vadd.f32 %v513_v11, %v412_v10 }
  0xdb   :  { %v506_v14 = vpop.f32.mrb[2].mxu0  ;;  %v514_v15 = vpop.f32.mrb[2].mxu1  ;;  %v295_v22 = vadd.f32 %v412_v10, %v174_v12  ;;  %v303_v23 = vadd.f32 %v412_v10, %v206_v13 }
  0xdc   :  { %v298_v18 = vadd.f32 %v506_v14, %v412_v10  ;;  %v306_v19 = vadd.f32 %v514_v15, %v412_v10  ;;  %v177_v20 = vpop.f32.mrb[3].mxu0  ;;  %v209_v21 = vpop.f32.mrb[3].mxu1 }
  0xdd   :  { %v296_v24 = vadd.f32 %v412_v10, %v177_v20  ;;  %v304_v25 = vadd.f32 %v412_v10, %v209_v21 }
  0xde   :  { %v453_v26 = vpack.c.bf16 %v298_v18, %v297_v16  ;;  %v473_v27 = vpack.c.bf16 %v306_v19, %v305_v17 }
  0xdf   :  { %v448_v28 = vpack.c.bf16 %v296_v24, %v295_v22  ;;  %v468_v29 = vpack.c.bf16 %v304_v25, %v303_v23 }
  0xe0   :  { %485 = vst [vmem:[%s615_s3 + $0x8] sm:$0xff] %v453_v26   ;;  %489 = vst [vmem:[%s615_s3 + $0x28] sm:$0xff] %v473_v27  }
  0xe1   :  { %449 = vst [vmem:[%s615_s3] sm:$0xff] %v448_v28   ;;  %488 = vst [vmem:[%s615_s3 + $0x20] sm:$0xff] %v468_v29   ;;  %v509_v30 = vpop.f32.mrb[4].mxu0  ;;  %v517_v31 = vpop.f32.mrb[4].mxu1 }
  0xe2   :  { %v190_v32 = vpop.f32.mrb[5].mxu0  ;;  %v222_v33 = vpop.f32.mrb[5].mxu1  ;;  %v301_v36 = vadd.f32 %v509_v30, %v412_v10  ;;  %v309_v37 = vadd.f32 %v517_v31, %v412_v10 }
  0xe3   :  { %v510_v34 = vpop.f32.mrb[6].mxu0  ;;  %v518_v35 = vpop.f32.mrb[6].mxu1  ;;  %v299_v42 = vadd.f32 %v412_v10, %v190_v32  ;;  %v307_v43 = vadd.f32 %v412_v10, %v222_v33 }
  0xe4   :  { %v302_v38 = vadd.f32 %v510_v34, %v412_v10  ;;  %v310_v39 = vadd.f32 %v518_v35, %v412_v10  ;;  %v193_v40 = vpop.f32.mrb[7].mxu0  ;;  %v225_v41 = vpop.f32.mrb[7].mxu1 }
  0xe5   :  { %v300_v44 = vadd.f32 %v412_v10, %v193_v40  ;;  %v308_v45 = vadd.f32 %v412_v10, %v225_v41 }
  0xe6   :  { %v463_v46 = vpack.c.bf16 %v302_v38, %v301_v36  ;;  %v483_v47 = vpack.c.bf16 %v310_v39, %v309_v37 }
  0xe7   :  { %v458_v48 = vpack.c.bf16 %v300_v44, %v299_v42  ;;  %v478_v49 = vpack.c.bf16 %v308_v45, %v307_v43 }
  0xe8   :  { %487 = vst [vmem:[%s615_s3 + $0x18] sm:$0xff] %v463_v46   ;;  %491 = vst [vmem:[%s615_s3 + $0x38] sm:$0xff] %v483_v47  }
  0xe9   :  { %486 = vst [vmem:[%s615_s3 + $0x10] sm:$0xff] %v458_v48   ;;  %490 = vst [vmem:[%s615_s3 + $0x30] sm:$0xff] %v478_v49  }

// kernel: fwd.5
= control target key start
LH: loop header
LB: loop body
LE: loop exit
PB: predicated region body
PF: predicated region fallthrough
CT: control target
= control target key end

     0   :  { %s1443_s12 = smov 0   ;;  %s1445_s13 = smov 0   ;;  %s1575_s0 = inlined_call_operand.vmem [shape: bf16[512,16], index: 0, kind: input, shape index: {}]   ;;  %s1576_s1 = inlined_call_operand.vmem [shape: bf16[16,128], index: 1, kind: input, shape index: {}]   ;;  %s1577_s2 = inlined_call_operand.vmem [shape: f32[1,128], index: 2, kind: input, shape index: {}]   ;;  %s1578_s3 = inlined_call_operand.vmem [shape: bf16[512,128], index: 3, kind: output, shape index: {}]  }
   0x1   :  { %s1447_s14 = smov 0  }
   0x2 LB: > { %s32_s15 = sadd.s32 1, %s1417_s13  ;;  %p1105_p0 = scmp.ge.s32.totalorder %s1421_s14, 1  ;;  %s1421_s14 = sphi %s1447_s14, %s13_s14   ;;  %s1417_s13 = sphi %s1445_s13, %s1580_s13   ;;  %s1413_s12 = sphi %s1443_s12, %s1579_s12  }
   0x3   : > { %p34_p1 = scmp.ge.s32.totalorder %s32_s15, 2  ;;  %p188_p2 = scmp.lt.s32.totalorder %s1421_s14, 3 }
   0x5   : > { %s1582_s15 = smov (%p34_p1, %s32_s15), 0  ;;  %p189_p3 = pnand %p1105_p0, %p188_p2 }
   0x6   : > { %v1382_v0 = vld [vmem:[%s1576_s1] sm:$0xff] (!%p189_p3)   ;;  %s1106_s18 = sshll.u32 (!%p189_p3), %s1413_s12, 5  ;;  %vm448_vm0 = vcmask (!%p189_p3), 130048  }
   0x7   : > { %192 = sbr.rel (%p189_p3) target bundleno = 266 (0x10a), region = 32  ;;  %p230_p4 = scmp.lt.s32.totalorder (!%p189_p3), %s1106_s18, 63  ;;  %1322 = vmatprep.subr.bf16.mxu0 (!%p189_p3), %v1382_v0  ;;  %1356 = vmatprep.subr.bf16.mxu1 (!%p189_p3), %v1382_v0  ;;  %v1509_v17 = vld [vmem:[%s1577_s2] ss:$0 sm:$0xff] (!%p189_p3) }
   0x8   : > { %1323 = vmatpush3.bf16.msra.mxu0 (!%p189_p3), %v1382_v0  ;;  %1357 = vmatpush3.bf16.msra.mxu1 (!%p189_p3), %v1382_v0 }
   0xe   : > { %s1584_s18 = smov (!%p230_p4, %s1106_s18), 63 }
   0xf   : > { %s1107_s19 = sshll.u32 %s1584_s18, 2 }
  0x10   : > { %s1472_s22 = scalar_lea.vmem %s1575_s0, %s1107_s19  ;;  %s1524_s27 = scalar_lea.vmem %s1578_s3, %s1107_s19 }
  0x11   : > { %v1383_v1 = vld [vmem:[%s1472_s22] sm:$0xff]   ;;  %v1385_v3 = vld [vmem:[%s1472_s22 + $0x8] sm:$0xff]   ;;  %v1387_v5 = vld [vmem:[%s1472_s22 + $0x10] sm:$0xff]  }
  0x12   : > { %v1384_v2 = vld [vmem:[%s1472_s22 + $0x40] sm:$0xff]   ;;  %1324 = vmatprep.mubr.msk.bf16.mxu0 %vm448_vm0, %v1383_v1  ;;  %v1386_v4 = vld [vmem:[%s1472_s22 + $0x48] sm:$0xff]   ;;  %v1388_v6 = vld [vmem:[%s1472_s22 + $0x50] sm:$0xff]  }
  0x13   : > { %1340 = vmatprep.mubr.msk.bf16.mxu1 %vm448_vm0, %v1384_v2  ;;  %1325 = vmatmul.mubr.msk.bf16.vlgmr.msra.gmra.mrb[0].mxu0 %vm448_vm0, %v1385_v3  ;;  %v1389_v7 = vld [vmem:[%s1472_s22 + $0x18] sm:$0xff]   ;;  %v1391_v9 = vld [vmem:[%s1472_s22 + $0x20] sm:$0xff]   ;;  %v1393_v11 = vld [vmem:[%s1472_s22 + $0x28] sm:$0xff]  }
  0x14   : > { %1341 = vmatmul.mubr.msk.bf16.vlgmr.msra.gmra.mrb[0].mxu1 %vm448_vm0, %v1386_v4  ;;  %1328 = vmatprep.mubr.msk.bf16.mxu0 %vm448_vm0, %v1387_v5  ;;  %v1390_v8 = vld [vmem:[%s1472_s22 + $0x58] sm:$0xff]   ;;  %v1392_v10 = vld [vmem:[%s1472_s22 + $0x60] sm:$0xff]   ;;  %v1394_v12 = vld [vmem:[%s1472_s22 + $0x68] sm:$0xff]  }
  0x15   : > { %1344 = vmatprep.mubr.msk.bf16.mxu1 %vm448_vm0, %v1388_v6  ;;  %v1395_v13 = vld [vmem:[%s1472_s22 + $0x30] sm:$0xff]   ;;  %v1397_v15 = vld [vmem:[%s1472_s22 + $0x38] sm:$0xff]  }
  0x16   : > { %v1396_v14 = vld [vmem:[%s1472_s22 + $0x70] sm:$0xff]   ;;  %v1398_v16 = vld [vmem:[%s1472_s22 + $0x78] sm:$0xff]  }
  0x1b   : > { %1329 = vmatmul.mubr.msk.bf16.gmra.mrb[4].mxu0 %vm448_vm0, %v1389_v7 }
  0x1c   : > { %1345 = vmatmul.mubr.msk.bf16.gmra.mrb[4].mxu1 %vm448_vm0, %v1390_v8  ;;  %1332 = vmatprep.mubr.msk.bf16.mxu0 %vm448_vm0, %v1391_v9 }
  0x1d   : > { %1348 = vmatprep.mubr.msk.bf16.mxu1 %vm448_vm0, %v1392_v10 }
  0x23   : > { %1333 = vmatmul.mubr.msk.bf16.gmra.mrb[8].mxu0 %vm448_vm0, %v1393_v11 }
  0x24   : > { %1349 = vmatmul.mubr.msk.bf16.gmra.mrb[8].mxu1 %vm448_vm0, %v1394_v12  ;;  %1336 = vmatprep.mubr.msk.bf16.mxu0 %vm448_vm0, %v1395_v13 }
  0x25   : > { %1352 = vmatprep.mubr.msk.bf16.mxu1 %vm448_vm0, %v1396_v14 }
  0x2b   : > { %1337 = vmatmul.mubr.msk.bf16.gmra.mrb[12].mxu0 %vm448_vm0, %v1397_v15 }
  0x2c   : > { %1353 = vmatmul.mubr.msk.bf16.gmra.mrb[12].mxu1 %vm448_vm0, %v1398_v16 }
  0xe6   : > { %v1326_v18 = vpop.f32.mrb[0].mxu0 }
  0xe7   : > { %v766_v19 = vadd.f32 %v1326_v18, %v1509_v17  ;;  %v1342_v20 = vpop.f32.mrb[0].mxu1  ;;  %v531_v21 = vpop.f32.mrb[1].mxu0 }
  0xe8   : > { %v782_v22 = vadd.f32 %v1342_v20, %v1509_v17  ;;  %v764_v23 = vadd.f32 %v1509_v17, %v531_v21  ;;  %v595_v24 = vpop.f32.mrb[1].mxu1  ;;  %v1327_v25 = vpop.f32.mrb[2].mxu0 }
  0xe9   : > { %v780_v26 = vadd.f32 %v1509_v17, %v595_v24  ;;  %v767_v27 = vadd.f32 %v1327_v25, %v1509_v17  ;;  %v1343_v28 = vpop.f32.mrb[2].mxu1  ;;  %v534_v29 = vpop.f32.mrb[3].mxu0  ;;  %v798_v33 = vmax.f32 %v766_v19, 0.0 }
  0xea   : > { %v783_v30 = vadd.f32 %v1343_v28, %v1509_v17  ;;  %v765_v31 = vadd.f32 %v1509_v17, %v534_v29  ;;  %v598_v32 = vpop.f32.mrb[3].mxu1  ;;  %v814_v36 = vmax.f32 %v782_v22, 0.0  ;;  %v796_v37 = vmax.f32 %v764_v23, 0.0 }
  0xeb   : > { %v799_v34 = vmax.f32 %v767_v27, 0.0  ;;  %v781_v35 = vadd.f32 %v1509_v17, %v598_v32  ;;  %v812_v40 = vmax.f32 %v780_v26, 0.0 }
  0xec   : > { %v815_v38 = vmax.f32 %v783_v30, 0.0  ;;  %v797_v39 = vmax.f32 %v765_v31, 0.0 }
  0xed   : > { %v1218_v41 = vpack.c.bf16 %v799_v34, %v798_v33  ;;  %v813_v42 = vmax.f32 %v781_v35, 0.0 }
  0xee   : > { %v1258_v43 = vpack.c.bf16 %v815_v38, %v814_v36  ;;  %v1213_v44 = vpack.c.bf16 %v797_v39, %v796_v37  ;;  %v1330_v45 = vpop.f32.mrb[4].mxu0 }
  0xef   : > { %1290 = vst [vmem:[%s1524_s27 + $0x8] sm:$0xff] %v1218_v41   ;;  %v1253_v46 = vpack.c.bf16 %v813_v42, %v812_v40  ;;  %v770_v47 = vadd.f32 %v1330_v45, %v1509_v17  ;;  %v1346_v48 = vpop.f32.mrb[4].mxu1  ;;  %v547_v49 = vpop.f32.mrb[5].mxu0 }
  0xf0   : > { %1298 = vst [vmem:[%s1524_s27 + $0x48] sm:$0xff] %v1258_v43   ;;  %1214 = vst [vmem:[%s1524_s27] sm:$0xff] %v1213_v44   ;;  %v786_v50 = vadd.f32 %v1346_v48, %v1509_v17  ;;  %v768_v51 = vadd.f32 %v1509_v17, %v547_v49  ;;  %v611_v52 = vpop.f32.mrb[5].mxu1  ;;  %v1331_v53 = vpop.f32.mrb[6].mxu0 }
  0xf1   : > { %1297 = vst [vmem:[%s1524_s27 + $0x40] sm:$0xff] %v1253_v46   ;;  %v784_v54 = vadd.f32 %v1509_v17, %v611_v52  ;;  %v771_v55 = vadd.f32 %v1331_v53, %v1509_v17  ;;  %v1347_v56 = vpop.f32.mrb[6].mxu1  ;;  %v550_v57 = vpop.f32.mrb[7].mxu0  ;;  %v802_v61 = vmax.f32 %v770_v47, 0.0 }
  0xf2   : > { %v787_v58 = vadd.f32 %v1347_v56, %v1509_v17  ;;  %v769_v59 = vadd.f32 %v1509_v17, %v550_v57  ;;  %v614_v60 = vpop.f32.mrb[7].mxu1  ;;  %v818_v0 = vmax.f32 %v786_v50, 0.0  ;;  %v800_v1 = vmax.f32 %v768_v51, 0.0 }
  0xf3   : > { %v803_v62 = vmax.f32 %v771_v55, 0.0  ;;  %v785_v63 = vadd.f32 %v1509_v17, %v614_v60  ;;  %v816_v4 = vmax.f32 %v784_v54, 0.0 }
  0xf4   : > { %v819_v2 = vmax.f32 %v787_v58, 0.0  ;;  %v801_v3 = vmax.f32 %v769_v59, 0.0 }
  0xf5   : > { %v1228_v5 = vpack.c.bf16 %v803_v62, %v802_v61  ;;  %v817_v6 = vmax.f32 %v785_v63, 0.0 }
  0xf6   : > { %v1268_v7 = vpack.c.bf16 %v819_v2, %v818_v0  ;;  %v1223_v8 = vpack.c.bf16 %v801_v3, %v800_v1  ;;  %v1334_v9 = vpop.f32.mrb[8].mxu0 }
  0xf7   : > { %1292 = vst [vmem:[%s1524_s27 + $0x18] sm:$0xff] %v1228_v5   ;;  %v1263_v10 = vpack.c.bf16 %v817_v6, %v816_v4  ;;  %v774_v11 = vadd.f32 %v1334_v9, %v1509_v17  ;;  %v1350_v12 = vpop.f32.mrb[8].mxu1  ;;  %v563_v13 = vpop.f32.mrb[9].mxu0 }
  0xf8   : > { %1300 = vst [vmem:[%s1524_s27 + $0x58] sm:$0xff] %v1268_v7   ;;  %1291 = vst [vmem:[%s1524_s27 + $0x10] sm:$0xff] %v1223_v8   ;;  %v790_v14 = vadd.f32 %v1350_v12, %v1509_v17  ;;  %v772_v15 = vadd.f32 %v1509_v17, %v563_v13  ;;  %v627_v16 = vpop.f32.mrb[9].mxu1  ;;  %v1335_v18 = vpop.f32.mrb[10].mxu0 }
  0xf9   : > { %1299 = vst [vmem:[%s1524_s27 + $0x50] sm:$0xff] %v1263_v10   ;;  %v788_v19 = vadd.f32 %v1509_v17, %v627_v16  ;;  %v775_v20 = vadd.f32 %v1335_v18, %v1509_v17  ;;  %v1351_v21 = vpop.f32.mrb[10].mxu1  ;;  %v566_v22 = vpop.f32.mrb[11].mxu0  ;;  %v806_v26 = vmax.f32 %v774_v11, 0.0 }
  0xfa   : > { %v791_v23 = vadd.f32 %v1351_v21, %v1509_v17  ;;  %v773_v24 = vadd.f32 %v1509_v17, %v566_v22  ;;  %v630_v25 = vpop.f32.mrb[11].mxu1  ;;  %v822_v29 = vmax.f32 %v790_v14, 0.0  ;;  %v804_v30 = vmax.f32 %v772_v15, 0.0 }
  0xfb   : > { %v807_v27 = vmax.f32 %v775_v20, 0.0  ;;  %v789_v28 = vadd.f32 %v1509_v17, %v630_v25  ;;  %v820_v33 = vmax.f32 %v788_v19, 0.0 }
  0xfc   : > { %v823_v31 = vmax.f32 %v791_v23, 0.0  ;;  %v805_v32 = vmax.f32 %v773_v24, 0.0 }
  0xfd   : > { %v1238_v34 = vpack.c.bf16 %v807_v27, %v806_v26  ;;  %v821_v35 = vmax.f32 %v789_v28, 0.0 }
  0xfe   : > { %v1278_v36 = vpack.c.bf16 %v823_v31, %v822_v29  ;;  %v1233_v37 = vpack.c.bf16 %v805_v32, %v804_v30  ;;  %v1338_v38 = vpop.f32.mrb[12].mxu0 }
  0xff   : > { %1294 = vst [vmem:[%s1524_s27 + $0x28] sm:$0xff] %v1238_v34   ;;  %v1273_v39 = vpack.c.bf16 %v821_v35, %v820_v33  ;;  %v778_v40 = vadd.f32 %v1338_v38, %v1509_v17  ;;  %v1354_v41 = vpop.f32.mrb[12].mxu1  ;;  %v579_v42 = vpop.f32.mrb[13].mxu0 }
 0x100   : > { %1302 = vst [vmem:[%s1524_s27 + $0x68] sm:$0xff] %v1278_v36   ;;  %1293 = vst [vmem:[%s1524_s27 + $0x20] sm:$0xff] %v1233_v37   ;;  %v794_v43 = vadd.f32 %v1354_v41, %v1509_v17  ;;  %v776_v44 = vadd.f32 %v1509_v17, %v579_v42  ;;  %v643_v45 = vpop.f32.mrb[13].mxu1  ;;  %v1339_v46 = vpop.f32.mrb[14].mxu0 }
 0x101   : > { %1301 = vst [vmem:[%s1524_s27 + $0x60] sm:$0xff] %v1273_v39   ;;  %v792_v47 = vadd.f32 %v1509_v17, %v643_v45  ;;  %v779_v48 = vadd.f32 %v1339_v46, %v1509_v17  ;;  %v1355_v49 = vpop.f32.mrb[14].mxu1  ;;  %v582_v50 = vpop.f32.mrb[15].mxu0  ;;  %v810_v54 = vmax.f32 %v778_v40, 0.0 }
 0x102   : > { %v795_v51 = vadd.f32 %v1355_v49, %v1509_v17  ;;  %v777_v52 = vadd.f32 %v1509_v17, %v582_v50  ;;  %v646_v53 = vpop.f32.mrb[15].mxu1  ;;  %v826_v57 = vmax.f32 %v794_v43, 0.0  ;;  %v808_v58 = vmax.f32 %v776_v44, 0.0 }
 0x103   : > { %v811_v55 = vmax.f32 %v779_v48, 0.0  ;;  %v793_v56 = vadd.f32 %v1509_v17, %v646_v53  ;;  %v824_v61 = vmax.f32 %v792_v47, 0.0 }
 0x104   : > { %v827_v59 = vmax.f32 %v795_v51, 0.0  ;;  %v809_v60 = vmax.f32 %v777_v52, 0.0 }
 0x105   : > { %v1248_v62 = vpack.c.bf16 %v811_v55, %v810_v54  ;;  %v825_v63 = vmax.f32 %v793_v56, 0.0 }
 0x106   : > { %v1288_v0 = vpack.c.bf16 %v827_v59, %v826_v57  ;;  %v1243_v1 = vpack.c.bf16 %v809_v60, %v808_v58 }
 0x107   : > { %1296 = vst [vmem:[%s1524_s27 + $0x38] sm:$0xff] %v1248_v62   ;;  %v1283_v2 = vpack.c.bf16 %v825_v63, %v824_v61 }
 0x108   : > { %1304 = vst [vmem:[%s1524_s27 + $0x78] sm:$0xff] %v1288_v0   ;;  %1295 = vst [vmem:[%s1524_s27 + $0x30] sm:$0xff] %v1243_v1  }
 0x109   : > { %1303 = vst [vmem:[%s1524_s27 + $0x70] sm:$0xff] %v1283_v2  }
 0x10a PF: > { %s13_s14 = sadd.s32 1, %s1421_s14   ;;  %s1579_s12 = smov %s1417_s13 }
 0x10b   : > { %p10_p5 = scmp.ge.s32.totalorder %s13_s14, 4   ;;  %s1580_s13 = smov %s1582_s15 }
 0x10d   :  { %12 = sbr.rel (!%p10_p5) target bundleno = 2 (0x2), region = 76 }

// kernel: fwd.7
= control target key start
LH: loop header
LB: loop body
LE: loop exit
PB: predicated region body
PF: predicated region fallthrough
CT: control target
= control target key end

     0   :  { %s1127_s27 = smov 0   ;;  %s1316_s0 = inlined_call_operand.vmem [shape: bf16[2,64,128], index: 0, kind: input, shape index: {}]   ;;  %s1317_s1 = inlined_call_operand.vmem [shape: bf16[2,64,128], index: 1, kind: input, shape index: {}]   ;;  %s1318_s2 = inlined_call_operand.vmem [shape: bf16[128,128], index: 2, kind: input, shape index: {}]   ;;  %s1319_s3 = inlined_call_operand.vmem [shape: f32[1,128], index: 3, kind: input, shape index: {}]   ;;  %s1320_s4 = inlined_call_operand.vmem [shape: f32[128,128], index: 4, kind: input, shape index: {}]   ;;  %s1321_s5 = inlined_call_operand.vmem [shape: f32[1,128], index: 5, kind: input, shape index: {}]   ;;  %s1322_s6 = inlined_call_operand.vmem [shape: f32[128,128], index: 6, kind: input, shape index: {}]   ;;  %s1323_s7 = inlined_call_operand.vmem [shape: f32[1,128], index: 7, kind: input, shape index: {}]   ;;  %s1324_s8 = inlined_call_operand.vmem [shape: f32[2,64,128], index: 8, kind: output, shape index: {}]  }
   0x1 LB: > { %s808_s28 = sadd.s32 4294967295, %s1077_s27   ;;  %p812_p0 = scmp.ge.s32.totalorder %s1077_s27, 1  ;;  %s1077_s27 = sphi %s1127_s27, %s18_s27  }
   0x2   : > { %p272_p1 = scmp.lt.s32.totalorder %s1077_s27, 3 }
   0x4   : > { %p273_p2 = pnand %p812_p0, %p272_p1 }
   0x5   : > { %v1055_v0 = vld [vmem:[%s1318_s2] sm:$0xff] (!%p273_p2)   ;;  %p311_p3 = scmp.lt.s32.totalorder (!%p273_p2), %s808_s28, 1  ;;  %v1056_v1 = vld [vmem:[%s1318_s2 + $0x8] sm:$0xff] (!%p273_p2)   ;;  %v1057_v2 = vld [vmem:[%s1318_s2 + $0x10] sm:$0xff] (!%p273_p2)   ;;  %v1079_v15 = vmov (!%p273_p2), 0.0|0.0   ;;  %vm1080_vm0 = vmmov (!%p273_p2), 0  }
   0x6   : > { %276 = sbr.rel (%p273_p2) target bundleno = 753 (0x2f1), region = 52  ;;  %902 = vmatprep.subr.bf16.mxu0 (!%p273_p2), %v1055_v0  ;;  %v1058_v3 = vld [vmem:[%s1318_s2 + $0x18] sm:$0xff] (!%p273_p2)   ;;  %v1059_v5 = vld [vmem:[%s1318_s2 + $0x20] sm:$0xff] (!%p273_p2)   ;;  %v1060_v6 = vld [vmem:[%s1318_s2 + $0x28] sm:$0xff] (!%p273_p2)   ;;  %996 = vmatprep.subr.bf16.mxu1 (!%p273_p2), %v1079_v15  ;;  %v1081_v33 = vmov (!%p273_p2), 0.0  }
   0x7   : > { %903 = vmatpush3.bf16.msra.mxu0 (!%p273_p2), %v1055_v0  ;;  %v1061_v7 = vld [vmem:[%s1318_s2 + $0x30] sm:$0xff] (!%p273_p2)   ;;  %v1062_v8 = vld [vmem:[%s1318_s2 + $0x38] sm:$0xff] (!%p273_p2)   ;;  %v509_v12 = vld [vmem:[%s1320_s4] sm:$0xff] (!%p273_p2)  ;;  %958 = vmatprep.mubr.msk.f32.mxu1 (!%p273_p2), %vm1080_vm0, %v1081_v33 }
   0x8   : > { %904 = vmatprep.subr.bf16.mxu0 (!%p273_p2), %v1056_v1  ;;  %v510_v13 = vld [vmem:[%s1320_s4 + $0x8] sm:$0xff] (!%p273_p2)  ;;  %v511_v16 = vld [vmem:[%s1320_s4 + $0x10] sm:$0xff] (!%p273_p2)  ;;  %v512_v17 = vld [vmem:[%s1320_s4 + $0x18] sm:$0xff] (!%p273_p2) }
   0x9   : > { %v997_v14 = vpack.c.bf16 (!%p273_p2), %v510_v13, %v509_v12  ;;  %v1000_v18 = vpack.c.bf16 (!%p273_p2), %v512_v17, %v511_v16  ;;  %v513_v19 = vld [vmem:[%s1320_s4 + $0x20] sm:$0xff] (!%p273_p2)  ;;  %v514_v20 = vld [vmem:[%s1320_s4 + $0x28] sm:$0xff] (!%p273_p2)  ;;  %v515_v22 = vld [vmem:[%s1320_s4 + $0x30] sm:$0xff] (!%p273_p2) }
   0xa   : > { %v1003_v21 = vpack.c.bf16 (!%p273_p2), %v514_v20, %v513_v19  ;;  %v516_v23 = vld [vmem:[%s1320_s4 + $0x38] sm:$0xff] (!%p273_p2)  ;;  %v517_v25 = vld [vmem:[%s1320_s4 + $0x40] sm:$0xff] (!%p273_p2)  ;;  %v518_v26 = vld [vmem:[%s1320_s4 + $0x48] sm:$0xff] (!%p273_p2) }
   0xb   : > { %905 = vmatpush3.bf16.msra.mxu0 (!%p273_p2), %v1056_v1  ;;  %998 = vmatpush3.bf16.msra.mxu1 (!%p273_p2), %v997_v14  ;;  %v1006_v24 = vpack.c.bf16 (!%p273_p2), %v516_v23, %v515_v22  ;;  %v1009_v27 = vpack.c.bf16 (!%p273_p2), %v518_v26, %v517_v25  ;;  %v519_v28 = vld [vmem:[%s1320_s4 + $0x50] sm:$0xff] (!%p273_p2)  ;;  %v520_v29 = vld [vmem:[%s1320_s4 + $0x58] sm:$0xff] (!%p273_p2)  ;;  %v521_v30 = vld [vmem:[%s1320_s4 + $0x60] sm:$0xff] (!%p273_p2) }
   0xc   : > { %906 = vmatprep.subr.bf16.mxu0 (!%p273_p2), %v1057_v2  ;;  %999 = vmatprep.subr.bf16.mxu1 (!%p273_p2), %v1079_v15  ;;  %v1012_v31 = vpack.c.bf16 (!%p273_p2), %v520_v29, %v519_v28  ;;  %v522_v32 = vld [vmem:[%s1320_s4 + $0x68] sm:$0xff] (!%p273_p2)  ;;  %v523_v35 = vld [vmem:[%s1320_s4 + $0x70] sm:$0xff] (!%p273_p2)  ;;  %v524_v36 = vld [vmem:[%s1320_s4 + $0x78] sm:$0xff] (!%p273_p2) }
   0xd   : > { %s1326_s28 = smov (!%p311_p3, %s808_s28), 1  ;;  %v1015_v34 = vpack.c.bf16 %v522_v32, %v521_v30  ;;  %v1018_v37 = vpack.c.bf16 %v524_v36, %v523_v35  ;;  %v597_v38 = vld [vmem:[%s1322_s6] sm:$0xff]  ;;  %v598_v39 = vld [vmem:[%s1322_s6 + $0x8] sm:$0xff]  ;;  %v599_v40 = vld [vmem:[%s1322_s6 + $0x10] sm:$0xff] }
   0xe   : > { %s834_s13 = sshll.u32 %s1326_s28, 5  ;;  %v1021_v41 = vpack.c.bf16 %v598_v39, %v597_v38  ;;  %v600_v42 = vld [vmem:[%s1322_s6 + $0x18] sm:$0xff]  ;;  %v601_v44 = vld [vmem:[%s1322_s6 + $0x20] sm:$0xff]  ;;  %v602_v45 = vld [vmem:[%s1322_s6 + $0x28] sm:$0xff]  ;;  %s836_s24 = sshll.u32 %s1326_s28, 6 }
   0xf   : > { %s315_s16 = scalar_lea.vmem %s1316_s0, %s834_s13  ;;  %907 = vmatpush3.bf16.msra.mxu0 %v1057_v2  ;;  %1001 = vmatpush3.bf16.msra.mxu1 %v1000_v18  ;;  %v1024_v43 = vpack.c.bf16 %v600_v42, %v599_v40  ;;  %v1027_v46 = vpack.c.bf16 %v602_v45, %v601_v44  ;;  %v603_v47 = vld [vmem:[%s1322_s6 + $0x30] sm:$0xff]  ;;  %v604_v48 = vld [vmem:[%s1322_s6 + $0x38] sm:$0xff]  ;;  %v605_v50 = vld [vmem:[%s1322_s6 + $0x40] sm:$0xff]  ;;  %v705_v42 = vlaneseq  ;;  %s320_s23 = scalar_lea.vmem %s1317_s1, %s834_s13 }
  0x10   : > { %v1063_v4 = vld [vmem:[%s315_s16] sm:$0xff]   ;;  %908 = vmatprep.subr.bf16.mxu0 %v1058_v3  ;;  %v1064_v9 = vld [vmem:[%s315_s16 + $0x8] sm:$0xff]   ;;  %v1065_v10 = vld [vmem:[%s315_s16 + $0x10] sm:$0xff]   ;;  %1002 = vmatprep.subr.bf16.mxu1 %v1079_v15  ;;  %v1030_v49 = vpack.c.bf16 %v604_v48, %v603_v47  ;;  %s325_s28 = scalar_lea.vmem %s1324_s8, %s836_s24 }
  0x11   : > { %918 = vmatprep.mubr.bf16.mxu0 %v1063_v4  ;;  %v1066_v11 = vld [vmem:[%s315_s16 + $0x18] sm:$0xff]   ;;  %v606_v51 = vld [vmem:[%s1322_s6 + $0x48] sm:$0xff]  ;;  %v607_v53 = vld [vmem:[%s1322_s6 + $0x50] sm:$0xff] }
  0x12   : > { %v1033_v52 = vpack.c.bf16 %v606_v51, %v605_v50  ;;  %v608_v54 = vld [vmem:[%s1322_s6 + $0x58] sm:$0xff]  ;;  %v609_v56 = vld [vmem:[%s1322_s6 + $0x60] sm:$0xff]  ;;  %v610_v57 = vld [vmem:[%s1322_s6 + $0x68] sm:$0xff] }
  0x13   : > { %909 = vmatpush3.bf16.msra.mxu0 %v1058_v3  ;;  %1004 = vmatpush3.bf16.msra.mxu1 %v1003_v21  ;;  %v1036_v55 = vpack.c.bf16 %v608_v54, %v607_v53  ;;  %v1039_v58 = vpack.c.bf16 %v610_v57, %v609_v56  ;;  %v819_v60 = vld [vmem:[%s1319_s3] ss:$0 sm:$0xff]  ;;  %v611_v26 = vld [vmem:[%s1322_s6 + $0x70] sm:$0xff]  ;;  %v855_v48 = vld [vmem:[%s320_s23 + $0x18] sm:$0xff]  }
  0x14   : > { %910 = vmatprep.subr.bf16.mxu0 %v1059_v5  ;;  %1005 = vmatprep.subr.bf16.mxu1 %v1079_v15  ;;  %v525_v29 = vld [vmem:[%s1321_s5] sm:$0x1]  ;;  %v854_v47 = vld [vmem:[%s320_s23 + $0x10] sm:$0xff]   ;;  %v851_v57 = vunpack.c.l.bf16 %v855_v48 }
  0x15   : > { %v838_v44 = vld [vmem:[%s320_s23] sm:$0xff]   ;;  %v848_v56 = vunpack.c.h.bf16 %v854_v47 }
  0x16   : > { %v839_v50 = vunpack.c.l.bf16 %v838_v44  ;;  %v840_v51 = vunpack.c.h.bf16 %v838_v44 }
  0x17   : > { %911 = vmatpush3.bf16.msra.mxu0 %v1059_v5  ;;  %1007 = vmatpush3.bf16.msra.mxu1 %v1006_v24 }
  0x18   : > { %912 = vmatprep.subr.bf16.mxu0 %v1060_v6  ;;  %1008 = vmatprep.subr.bf16.mxu1 %v1079_v15 }
  0x1b   : > { %913 = vmatpush3.bf16.msra.mxu0 %v1060_v6  ;;  %1010 = vmatpush3.bf16.msra.mxu1 %v1009_v27  ;;  %v612_v27 = vld [vmem:[%s1322_s6 + $0x78] sm:$0xff] }
  0x1c   : > { %914 = vmatprep.subr.bf16.mxu0 %v1061_v7  ;;  %1011 = vmatprep.subr.bf16.mxu1 %v1079_v15  ;;  %v1042_v28 = vpack.c.bf16 %v612_v27, %v611_v26 }
  0x1f   : > { %915 = vmatpush3.bf16.msra.mxu0 %v1061_v7  ;;  %1013 = vmatpush3.bf16.msra.mxu1 %v1012_v31 }
  0x20   : > { %916 = vmatprep.subr.bf16.mxu0 %v1062_v8  ;;  %1014 = vmatprep.subr.bf16.mxu1 %v1079_v15 }
  0x23   : > { %917 = vmatpush3.bf16.msra.mxu0 %v1062_v8  ;;  %1016 = vmatpush3.bf16.msra.mxu1 %v1015_v34  ;;  %v613_v34 = vld [vmem:[%s1323_s7] sm:$0x1] }
  0x24   : > { %1020 = vmatprep.subr.bf16.mxu0 %v1079_v15  ;;  %1017 = vmatprep.subr.bf16.mxu1 %v1079_v15 }
  0x26   : > { %919 = vmatmul.mubr.bf16.vlgmr.msra.gmra.mrb[0].mxu0 %v1064_v9 }
  0x27   : > { %922 = vmatprep.mubr.bf16.mxu0 %v1065_v10  ;;  %1019 = vmatpush3.bf16.msra.mxu1 %v1018_v37 }
  0x28   : > { %1022 = vmatpush3.bf16.msra.mxu0 %v1021_v41 }
  0x29   : > { %1023 = vmatprep.subr.bf16.mxu0 %v1079_v15 }
  0x2c   : > { %1025 = vmatpush3.bf16.msra.mxu0 %v1024_v43  ;;  %v706_v43 = vshrl.u32 %v705_v42, 7 }
  0x2d   : > { %1026 = vmatprep.subr.bf16.mxu0 %v1079_v15 }
  0x2e   : > { %923 = vmatmul.mubr.bf16.gmra.mrb[4].mxu0 %v1066_v11  ;;  %v707_v45 = vsub.s32 0, %v706_v43 }
  0x2f   : > { %993 = vmatprep.mubr.msk.f32.mxu0 %vm1080_vm0, %v1081_v33 }
  0x30   : > { %1028 = vmatpush3.bf16.msra.mxu0 %v1027_v46  ;;  %v853_v46 = vld [vmem:[%s320_s23 + $0x8] sm:$0xff]  }
  0x31   : > { %1029 = vmatprep.subr.bf16.mxu0 %v1079_v15  ;;  %v844_v53 = vunpack.c.h.bf16 %v853_v46 }
  0x34   : > { %1031 = vmatpush3.bf16.msra.mxu0 %v1030_v49 }
  0x35   : > { %1032 = vmatprep.subr.bf16.mxu0 %v1079_v15 }
  0x38   : > { %1034 = vmatpush3.bf16.msra.mxu0 %v1033_v52  ;;  %v843_v52 = vunpack.c.l.bf16 %v853_v46 }
  0x39   : > { %1035 = vmatprep.subr.bf16.mxu0 %v1079_v15 }
  0x3c   : > { %1037 = vmatpush3.bf16.msra.mxu0 %v1036_v55  ;;  %v847_v55 = vunpack.c.l.bf16 %v854_v47 }
  0x3d   : > { %1038 = vmatprep.subr.bf16.mxu0 %v1079_v15 }
  0x40   : > { %1040 = vmatpush3.bf16.msra.mxu0 %v1039_v58  ;;  %v852_v58 = vunpack.c.h.bf16 %v855_v48 }
  0x41   : > { %1041 = vmatprep.subr.bf16.mxu0 %v1079_v15 }
  0x44   : > { %1043 = vmatpush3.bf16.msra.mxu0 %v1042_v28 }
  0xf9   : > { %v920_v59 = vpop.f32.mrb[0].mxu0 }
  0xfa   : > { %v464_v61 = vpop.f32.mrb[1].mxu0  ;;  %v1280_v2 = vadd.f32 %v920_v59, %v819_v60 }
  0xfb   : > { %v921_v62 = vpop.f32.mrb[2].mxu0  ;;  %v1276_v0 = vadd.f32 %v819_v60, %v464_v61 }
  0xfc   : > { %v467_v63 = vpop.f32.mrb[3].mxu0  ;;  %v1284_v4 = vadd.f32 %v921_v62, %v819_v60 }
  0xfd   : > { %v1278_v1 = vadd.f32 %v819_v60, %v467_v63 }
  0xff   : > { %v495_v3 = vadd.f32 %v1278_v1, %v1276_v0 }
 0x101   : > { %v496_v5 = vadd.f32 %v495_v3, %v1280_v2  ;;  %v924_v6 = vpop.f32.mrb[4].mxu0 }
 0x102   : > { %v480_v7 = vpop.f32.mrb[5].mxu0  ;;  %v489_v14 = vadd.f32 %v924_v6, %v819_v60 }
 0x103   : > { %v481_v8 = vadd.f32 %v819_v60, %v480_v7  ;;  %v497_v9 = vadd.f32 %v496_v5, %v1284_v4  ;;  %v925_v10 = vpop.f32.mrb[6].mxu0 }
 0x104   : > { %v483_v11 = vpop.f32.mrb[7].mxu0  ;;  %v492_v16 = vadd.f32 %v925_v10, %v819_v60 }
 0x105   : > { %v498_v12 = vadd.f32 %v497_v9, %v481_v8  ;;  %v484_v13 = vadd.f32 %v819_v60, %v483_v11 }
 0x107   : > { %v499_v15 = vadd.f32 %v498_v12, %v484_v13 }
 0x109   : > { %v500_v17 = vadd.f32 %v499_v15, %v489_v14 }
 0x10b   : > { %v501_v18 = vadd.f32 %v500_v17, %v492_v16 }
 0x10d   : > { %v502_v19 = vrot.slane %v501_v18, 4 }
 0x10f   : > { %v503_v20 = vadd.f32 %v502_v19, %v501_v18 }
 0x111   : > { %v504_v21 = vrot.slane %v503_v20, 2 }
 0x113   : > { %v505_v22 = vadd.f32 %v504_v21, %v503_v20 }
 0x115   : > { %v506_v23 = vrot.slane %v505_v22, 1 }
 0x117   : > { %v507_v24 = vadd.f32 %v506_v23, %v505_v22 }
 0x119   : > { %v508_v25 = vmul.f32 0.015625, %v507_v24 }
 0x11b   : > { %959 = vmatmul.mubr.f32.vlgmr.msra.gmra.mrb[0].mxu1 %v508_v25 }
 0x1ee   : > { %v592_v30 = vpop.f32.mrb[0].mxu1 }
 0x1ef   : > { %v593_v31 = vadd.f32 %v592_v30, %v525_v29  ;;  %v960_v32 = vpop.f32.mrb[1].mxu1 }
 0x1f1   : > { %v596_v33 = vmax.f32 %v593_v31, 0.0 }
 0x1f3   : > { %994 = vmatmul.mubr.f32.vlgmr.msra.gmra.mrb[8].mxu0 %v596_v33 }
 0x2c6   : > { %v680_v35 = vpop.f32.mrb[8].mxu0 }
 0x2c7   : > { %v681_v36 = vadd.f32 %v680_v35, %v613_v34  ;;  %v995_v37 = vpop.f32.mrb[9].mxu0 }
 0x2c9   : > { %v684_v38 = vsub.f32 0.0, %v681_v36 }
 0x2cb   : > { %v685_v39 = vmul.f32 1.442695, %v684_v38 }
 0x2cd   : > { %1067 = vpow2.f32 %v685_v39 }
 0x2d7   : > { %v1068_v40 = vpop.eup %1067 }
 0x2d8   : > { %v687_v41 = vadd.f32 1.0, %v1068_v40 }
 0x2da   : > { %1069 = vrcp.f32 %v687_v41 }
 0x2e4   : > { %v1070_v49 = vpop.eup %1069 }
 0x2e5   : > { %v708_v54 = vrot.slane %v1070_v49, %v707_v45 }
 0x2e7   : > { %v709_v59 = vmul.f32 %v708_v54, %v1276_v0  ;;  %v710_v60 = vmul.f32 %v708_v54, %v1278_v1  ;;  %v711_v61 = vmul.f32 %v708_v54, %v1280_v2  ;;  %v712_v62 = vmul.f32 %v708_v54, %v1284_v4 }
 0x2e8   : > { %v713_v63 = vmul.f32 %v708_v54, %v481_v8  ;;  %v714_v3 = vmul.f32 %v708_v54, %v484_v13  ;;  %v715_v5 = vmul.f32 %v708_v54, %v489_v14  ;;  %v716_v6 = vmul.f32 %v708_v54, %v492_v16 }
 0x2e9   : > { %v717_v7 = vadd.f32 %v839_v50, %v709_v59  ;;  %v718_v9 = vadd.f32 %v840_v51, %v710_v60  ;;  %v719_v10 = vadd.f32 %v843_v52, %v711_v61  ;;  %v720_v11 = vadd.f32 %v844_v53, %v712_v62 }
 0x2ea   : > { %v721_v12 = vadd.f32 %v847_v55, %v713_v63  ;;  %v722_v0 = vadd.f32 %v848_v56, %v714_v3  ;;  %v723_v15 = vadd.f32 %v851_v57, %v715_v5  ;;  %v724_v1 = vadd.f32 %v852_v58, %v716_v6 }
 0x2eb   : > { %v725_v17 = vmax.f32 %v717_v7, 0.0  ;;  %v726_v2 = vmax.f32 %v718_v9, 0.0  ;;  %v727_v18 = vmax.f32 %v719_v10, 0.0  ;;  %v728_v4 = vmax.f32 %v720_v11, 0.0 }
 0x2ec   : > { %v729_v8 = vmax.f32 %v721_v12, 0.0  ;;  %v730_v13 = vmax.f32 %v722_v0, 0.0  ;;  %v731_v14 = vmax.f32 %v723_v15, 0.0  ;;  %v732_v16 = vmax.f32 %v724_v1, 0.0 }
 0x2ed   : > { %733 = vst [vmem:[%s325_s28] sm:$0xff] %v725_v17  ;;  %734 = vst [vmem:[%s325_s28 + $0x8] sm:$0xff] %v726_v2 }
 0x2ee   : > { %735 = vst [vmem:[%s325_s28 + $0x10] sm:$0xff] %v727_v18  ;;  %736 = vst [vmem:[%s325_s28 + $0x18] sm:$0xff] %v728_v4 }
 0x2ef   : > { %737 = vst [vmem:[%s325_s28 + $0x20] sm:$0xff] %v729_v8  ;;  %738 = vst [vmem:[%s325_s28 + $0x28] sm:$0xff] %v730_v13 }
 0x2f0   : > { %739 = vst [vmem:[%s325_s28 + $0x30] sm:$0xff] %v731_v14  ;;  %740 = vst [vmem:[%s325_s28 + $0x38] sm:$0xff] %v732_v16 }
 0x2f1 PF: > { %s18_s27 = sadd.s32 1, %s1077_s27  }
 0x2f2   : > { %p15_p4 = scmp.ge.s32.totalorder %s18_s27, 4  }
 0x2f4   :  { %17 = sbr.rel (!%p15_p4) target bundleno = 1 (0x1), region = 85 }

// kernel: fwd.6
= control target key start
LH: loop header
LB: loop body
LE: loop exit
PB: predicated region body
PF: predicated region fallthrough
CT: control target
= control target key end

     0   :  { %s3178_s12 = smov 0   ;;  %s3180_s13 = smov 0   ;;  %s3562_s0 = inlined_call_operand.vmem [shape: bf16[2,36,9,128], index: 0, kind: input, shape index: {}]   ;;  %s3563_s1 = inlined_call_operand.vmem [shape: bf16[9,128,128], index: 1, kind: input, shape index: {}]   ;;  %s3564_s2 = inlined_call_operand.vmem [shape: f32[1,128], index: 2, kind: input, shape index: {}]   ;;  %s3565_s3 = inlined_call_operand.vmem [shape: bf16[2,64,128], index: 3, kind: output, shape index: {}]  }
   0x1   :  { %s3182_s14 = smov 0  }
   0x2 LB: > { %s25_s15 = sadd.s32 1, %s3152_s13  ;;  %p2254_p0 = scmp.ge.s32.totalorder %s3156_s14, 1  ;;  %s3156_s14 = sphi %s3182_s14, %s13_s14   ;;  %s3152_s13 = sphi %s3180_s13, %s3569_s13   ;;  %s3148_s12 = sphi %s3178_s12, %s3568_s12  }
   0x3   : > { %p27_p1 = scmp.ge.s32.totalorder %s25_s15, 2  ;;  %p168_p2 = scmp.lt.s32.totalorder %s3156_s14, 3 }
   0x5   : > { %s3571_s15 = smov (%p27_p1, %s25_s15), 0  ;;  %p169_p3 = pnand %p2254_p0, %p168_p2 }
   0x6   : > { %v3038_v0 = vld [vmem:[%s3563_s1 + $0x40] sm:$0xff] (!%p169_p3)   ;;  %p202_p4 = scmp.lt.s32.totalorder (!%p169_p3), %s3148_s12, 1  ;;  %v3040_v2 = vld [vmem:[%s3563_s1 + $0x48] sm:$0xff] (!%p169_p3)   ;;  %v3042_v4 = vld [vmem:[%s3563_s1 + $0x50] sm:$0xff] (!%p169_p3)   ;;  %vm563_vm0 = vsmask.f32 (!%p169_p3), 3328 }
   0x7   : > { %172 = sbr.rel (%p169_p3) target bundleno = 392 (0x188), region = 32  ;;  %v3039_v1 = vld [vmem:[%s3563_s1 + $0x100] sm:$0xff] (!%p169_p3)   ;;  %2717 = vmatprep.subr.bf16.mxu1 (!%p169_p3), %v3038_v0  ;;  %v3041_v3 = vld [vmem:[%s3563_s1 + $0x108] sm:$0xff] (!%p169_p3)   ;;  %v3043_v5 = vld [vmem:[%s3563_s1 + $0x110] sm:$0xff] (!%p169_p3)   ;;  %vm564_vm1 = vsmask.f32 (!%p169_p3), 7440 }
   0x8   : > { %2813 = vmatprep.subr.bf16.mxu0 (!%p169_p3), %v3039_v1  ;;  %2718 = vmatpush3.bf16.msra.mxu1 (!%p169_p3), %v3038_v0  ;;  %v3044_v6 = vld [vmem:[%s3563_s1 + $0x58] sm:$0xff] (!%p169_p3)   ;;  %v3046_v8 = vld [vmem:[%s3563_s1 + $0x60] sm:$0xff] (!%p169_p3)   ;;  %v3048_v10 = vld [vmem:[%s3563_s1 + $0x68] sm:$0xff] (!%p169_p3)  }
   0x9   : > { %2814 = vmatpush3.bf16.msra.mxu0 (!%p169_p3), %v3039_v1  ;;  %2719 = vmatprep.subr.bf16.mxu1 (!%p169_p3), %v3040_v2  ;;  %v3045_v7 = vld [vmem:[%s3563_s1 + $0x118] sm:$0xff] (!%p169_p3)   ;;  %v3047_v9 = vld [vmem:[%s3563_s1 + $0x120] sm:$0xff] (!%p169_p3)   ;;  %v3049_v12 = vld [vmem:[%s3563_s1 + $0x128] sm:$0xff] (!%p169_p3)  }
   0xa   : > { %2815 = vmatprep.subr.bf16.mxu0 (!%p169_p3), %v3041_v3  ;;  %v3050_v14 = vld [vmem:[%s3563_s1 + $0x70] sm:$0xff] (!%p169_p3)   ;;  %v3052_v16 = vld [vmem:[%s3563_s1 + $0x78] sm:$0xff] (!%p169_p3)   ;;  %v3055_v18 = vld [vmem:[%s3563_s1] sm:$0xff] (!%p169_p3)  }
   0xb   : > { %v3051_v15 = vld [vmem:[%s3563_s1 + $0x130] sm:$0xff] (!%p169_p3)   ;;  %v3053_v17 = vld [vmem:[%s3563_s1 + $0x138] sm:$0xff] (!%p169_p3)   ;;  %v3057_v19 = vld [vmem:[%s3563_s1 + $0x140] sm:$0xff] (!%p169_p3)  }
   0xc   : > { %2720 = vmatpush3.bf16.msra.mxu1 (!%p169_p3), %v3040_v2  ;;  %v3060_v22 = vld [vmem:[%s3563_s1 + $0x8] sm:$0xff] (!%p169_p3)   ;;  %v3062_v26 = vld [vmem:[%s3563_s1 + $0x10] sm:$0xff] (!%p169_p3)   ;;  %v3064_v28 = vld [vmem:[%s3563_s1 + $0x18] sm:$0xff] (!%p169_p3)  }
   0xd   : > { %2816 = vmatpush3.bf16.msra.mxu0 (!%p169_p3), %v3041_v3  ;;  %2721 = vmatprep.subr.bf16.mxu1 (!%p169_p3), %v3042_v4  ;;  %v3061_v23 = vld [vmem:[%s3563_s1 + $0x148] sm:$0xff] (!%p169_p3)   ;;  %v3063_v27 = vld [vmem:[%s3563_s1 + $0x150] sm:$0xff] (!%p169_p3)   ;;  %v3065_v31 = vld [vmem:[%s3563_s1 + $0x158] sm:$0xff] (!%p169_p3)  }
   0xe   : > { %s3573_s12 = smov (!%p202_p4, %s3148_s12), 1  ;;  %2817 = vmatprep.subr.bf16.mxu0 %v3043_v5  ;;  %v3066_v38 = vld [vmem:[%s3563_s1 + $0x20] sm:$0xff]   ;;  %v3068_v47 = vld [vmem:[%s3563_s1 + $0x28] sm:$0xff]   ;;  %vm3303_vm2 = vmor %vm563_vm0, %vm564_vm1 }
   0xf   : > { %s3013_s5 = smul.u32 288, %s3573_s12  ;;  %v3067_v43 = vld [vmem:[%s3563_s1 + $0x160] sm:$0xff]   ;;  %v3069_v50 = vld [vmem:[%s3563_s1 + $0x168] sm:$0xff]   ;;  %v3071_v2 = vld [vmem:[%s3563_s1 + $0x30] sm:$0xff]  }
  0x10   : > { %2722 = vmatpush3.bf16.msra.mxu1 %v3042_v4 }
  0x11   : > { %2818 = vmatpush3.bf16.msra.mxu0 %v3043_v5  ;;  %2723 = vmatprep.subr.bf16.mxu1 %v3044_v6  ;;  %s3232_s16 = scalar_lea.vmem %s3562_s0, %s3013_s5  ;;  %s2577_s5 = sshll.u32 %s3573_s12, 5 }
  0x12   : > { %2819 = vmatprep.subr.bf16.mxu0 %v3045_v7  ;;  %v3054_v11 = vld [vmem:[%s3232_s16 + $0x48] ss:$8 sps:$4 sm:$0xff]   ;;  %v3056_v13 = vld [vmem:[%s3232_s16 + $0xd8] ss:$8 sps:$4 sm:$0xff]   ;;  %v2407_v34 = vld [vmem:[%s3232_s16 + $0x94] sm:$0x1]  ;;  %s221_s8 = scalar_lea.vmem %s3565_s3, %s2577_s5 }
  0x13   : > { %2733 = vmatprep.mubr.bf16.mxu1 %v3054_v11  ;;  %2829 = vmatprep.mubr.bf16.mxu0 %v3056_v13  ;;  %v3058_v20 = vld [vmem:[%s3232_s16 + $0x58] ss:$8 sps:$4 sm:$0xff]   ;;  %v3059_v21 = vld [vmem:[%s3232_s16 + $0xe8] ss:$8 sps:$4 sm:$0xff]   ;;  %v2409_v39 = vld [vmem:[%s3232_s16 + $0x9c] sm:$0x1] }
  0x14   : > { %2724 = vmatpush3.bf16.msra.mxu1 %v3044_v6  ;;  %v3070_v24 = vld [vmem:[%s3232_s16 + $0x68] ss:$8 sps:$4 sm:$0xff]   ;;  %v3072_v25 = vld [vmem:[%s3232_s16 + $0xf8] ss:$8 sps:$4 sm:$0xff]   ;;  %v1200_v40 = vshll.u32 %v2407_v34, 16  ;;  %v1214_v46 = vshll.u32 %v2409_v39, 16 }
  0x15   : > { %2820 = vmatpush3.bf16.msra.mxu0 %v3045_v7  ;;  %2725 = vmatprep.subr.bf16.mxu1 %v3046_v8  ;;  %v3074_v29 = vld [vmem:[%s3232_s16 + $0x78] ss:$8 sps:$4 sm:$0xff]   ;;  %v3075_v30 = vld [vmem:[%s3232_s16 + $0x108] ss:$8 sps:$4 sm:$0xff]   ;;  %v2411_v57 = vld [vmem:[%s3232_s16 + $0xa4] sm:$0x1] }
  0x16   : > { %2821 = vmatprep.subr.bf16.mxu0 %v3047_v9  ;;  %v3078_v32 = vld [vmem:[%s3232_s16] ss:$8 sps:$4 sm:$0xff]   ;;  %v2406_v33 = vld [vmem:[%s3232_s16 + $0x90] sm:$0xf]  ;;  %v2408_v35 = vld [vmem:[%s3232_s16 + $0x98] sm:$0xf] }
  0x17   : > { %v1191_v36 = vshrl.u32 %v2406_v33, 16  ;;  %v1194_v37 = vshll.u32 %v2406_v33, 16  ;;  %v1205_v41 = vshrl.u32 %v2408_v35, 16  ;;  %v1208_v42 = vshll.u32 %v2408_v35, 16  ;;  %v2410_v56 = vld [vmem:[%s3232_s16 + $0xa0] sm:$0xf] }
  0x18   : > { %2726 = vmatpush3.bf16.msra.mxu1 %v3046_v8  ;;  %v1202_v52 = vrot.slane %v1200_v40, 5  ;;  %v1216_v55 = vrot.slane %v1214_v46, 5  ;;  %v2412_v59 = vld [vmem:[%s3232_s16 + $0xa8] sm:$0xf]  ;;  %v2413_v60 = vld [vmem:[%s3232_s16 + $0xac] sm:$0x1] }
  0x19   : > { %2822 = vmatpush3.bf16.msra.mxu0 %v3047_v9  ;;  %2727 = vmatprep.subr.bf16.mxu1 %v3048_v10  ;;  %v1193_v44 = vrot.slane %v1191_v36, 4  ;;  %v1196_v45 = vrot.slane %v1194_v37, 5  ;;  %v1207_v48 = vrot.slane %v1205_v41, 4  ;;  %v1210_v49 = vrot.slane %v1208_v42, 5  ;;  %v3073_v6 = vld [vmem:[%s3563_s1 + $0x170] sm:$0xff]  }
  0x1a   : > { %2823 = vmatprep.subr.bf16.mxu0 %v3049_v12  ;;  %v1219_v61 = vshrl.u32 %v2410_v56, 16  ;;  %v1222_v63 = vshll.u32 %v2410_v56, 16  ;;  %v1228_v0 = vshll.u32 %v2411_v57, 16  ;;  %v1233_v1 = vshrl.u32 %v2412_v59, 16  ;;  %v3092_v37 = vld [vmem:[%s3232_s16 + $0x20] ss:$8 sps:$4 sm:$0xff]  }
  0x1b   : > { %v1197_v51 = vor.u32 %v1196_v45, %v1193_v44  ;;  %v1211_v54 = vor.u32 %v1210_v49, %v1207_v48  ;;  %v1236_v5 = vshll.u32 %v2412_v59, 16  ;;  %v3095_v48 = vld [vmem:[%s3232_s16 + $0x30] ss:$8 sps:$4 sm:$0xff]   ;;  %v2418_v49 = vld [vmem:[%s3232_s16 + $0xc0] sm:$0xf] }
  0x1c   : > { %2728 = vmatpush3.bf16.msra.mxu1 %v3048_v10  ;;  %v1221_v4 = vrot.slane %v1219_v61, 4  ;;  %v1224_v8 = vrot.slane %v1222_v63, 5  ;;  %v1235_v9 = vrot.slane %v1233_v1, 4  ;;  %v1242_v10 = vshll.u32 %v2413_v60, 16  ;;  %v3086_v59 = vld [vmem:[%s3563_s1 + $0x98] sm:$0xff]  }
  0x1d   : > { %2824 = vmatpush3.bf16.msra.mxu0 %v3049_v12  ;;  %2729 = vmatprep.subr.bf16.mxu1 %v3050_v14  ;;  %v1198_v58 = vrot.slane %v1197_v51, 4  ;;  %v1212_v62 = vrot.slane %v1211_v54, 4  ;;  %v1230_v12 = vrot.slane %v1228_v0, 5  ;;  %v1238_v13 = vrot.slane %v1236_v5, 5  ;;  %v2420_v51 = vld [vmem:[%s3232_s16 + $0xc8] sm:$0xf] }
  0x1e   : > { %2825 = vmatprep.subr.bf16.mxu0 %v3051_v15  ;;  %v1275_v56 = vshrl.u32 %v2418_v49, 16  ;;  %v1278_v57 = vshll.u32 %v2418_v49, 16  ;;  %v1289_v61 = vshrl.u32 %v2420_v51, 16 }
  0x1f   : > { %v1203_v3 = vsel %vm3303_vm2, %v1198_v58, %v1202_v52  ;;  %v1217_v7 = vsel %vm3303_vm2, %v1212_v62, %v1216_v55  ;;  %v3085_v52 = vld [vmem:[%s3563_s1 + $0x190] sm:$0xff]   ;;  %v2421_v55 = vld [vmem:[%s3232_s16 + $0xcc] sm:$0x1]  ;;  %v1292_v62 = vshll.u32 %v2420_v51, 16 }
  0x20   : > { %2730 = vmatpush3.bf16.msra.mxu1 %v3050_v14  ;;  %v2438_v11 = vcombine.low %v1203_v3, %v1217_v7  ;;  %v3076_v14 = vld [vmem:[%s3563_s1 + $0x38] sm:$0xff]   ;;  %v1298_v63 = vshll.u32 %v2421_v55, 16  ;;  %v1277_v1 = vrot.slane %v1275_v56, 4 }
  0x21   : > { %2826 = vmatpush3.bf16.msra.mxu0 %v3051_v15  ;;  %2731 = vmatprep.subr.bf16.mxu1 %v3052_v16  ;;  %v1225_v15 = vor.u32 %v1224_v8, %v1221_v4  ;;  %v3087_v4 = vld [vmem:[%s3563_s1 + $0x198] sm:$0xff]   ;;  %v1294_v7 = vrot.slane %v1292_v62, 5 }
  0x22   : > { %2827 = vmatprep.subr.bf16.mxu0 %v3053_v17  ;;  %v1300_v8 = vrot.slane %v1298_v63, 5 }
  0x24   : > { %2732 = vmatpush3.bf16.msra.mxu1 %v3052_v16  ;;  %v1239_v16 = vor.u32 %v1238_v13, %v1235_v9  ;;  %v3088_v13 = vld [vmem:[%s3563_s1 + $0xa0] sm:$0xff]  }
  0x25   : > { %2828 = vmatpush3.bf16.msra.mxu0 %v3053_v17  ;;  %2741 = vmatprep.subr.bf16.mxu1 %v3055_v18  ;;  %v1226_v17 = vrot.slane %v1225_v15, 4 }
  0x26   : > { %2837 = vmatprep.subr.bf16.mxu0 %v3057_v19 }
  0x27   : > { %2734 = vmatmul.mubr.bf16.vlgmr.msra.gmra.mrb[0].mxu1 %v3058_v20  ;;  %v1240_v20 = vrot.slane %v1239_v16, 4  ;;  %v549_v16 = vld [vmem:[%s3232_s16 + $0x8] sm:$0xf] }
  0x28   : > { %2742 = vmatpush3.bf16.msra.mxu1 %v3055_v18  ;;  %2830 = vmatmul.mubr.bf16.vlgmr.msra.gmra.mrb[0].mxu0 %v3059_v21  ;;  %v1244_v18 = vrot.slane %v1242_v10, 5  ;;  %v3079_v21 = vld [vmem:[%s3563_s1 + $0x80] sm:$0xff]  }
  0x29   : > { %2838 = vmatpush3.bf16.msra.mxu0 %v3057_v19  ;;  %2743 = vmatprep.subr.bf16.mxu1 %v3060_v22  ;;  %v3077_v19 = vld [vmem:[%s3563_s1 + $0x178] sm:$0xff]  }
  0x2a   : > { %2839 = vmatprep.subr.bf16.mxu0 %v3061_v23  ;;  %2737 = vmatprep.mubr.bf16.mxu1 %v3070_v24  ;;  %v3080_v24 = vld [vmem:[%s3563_s1 + $0x180] sm:$0xff]  }
  0x2b   : > { %2833 = vmatprep.mubr.bf16.mxu0 %v3072_v25  ;;  %v3081_v25 = vld [vmem:[%s3232_s16 + $0x10] ss:$8 sps:$4 sm:$0xff]  }
  0x2c   : > { %2744 = vmatpush3.bf16.msra.mxu1 %v3060_v22  ;;  %v1231_v22 = vsel %vm3303_vm2, %v1226_v17, %v1230_v12  ;;  %v548_v12 = vld [vmem:[%s3232_s16 + $0x4] sm:$0x1]  ;;  %v550_v17 = vld [vmem:[%s3232_s16 + $0xc] sm:$0x1] }
  0x2d   : > { %2840 = vmatpush3.bf16.msra.mxu0 %v3061_v23  ;;  %2745 = vmatprep.subr.bf16.mxu1 %v3062_v26  ;;  %v1245_v23 = vsel %vm3303_vm2, %v1240_v20, %v1244_v18 }
  0x2e   : > { %2841 = vmatprep.subr.bf16.mxu0 %v3063_v27 }
  0x2f   : > { %2738 = vmatmul.mubr.bf16.gmra.mrb[4].mxu1 %v3074_v29  ;;  %v3083_v29 = vld [vmem:[%s3563_s1 + $0x188] sm:$0xff]  }
  0x30   : > { %2746 = vmatpush3.bf16.msra.mxu1 %v3062_v26  ;;  %2834 = vmatmul.mubr.bf16.gmra.mrb[4].mxu0 %v3075_v30  ;;  %v3082_v26 = vld [vmem:[%s3563_s1 + $0x88] sm:$0xff]   ;;  %v2415_v30 = vld [vmem:[%s3232_s16 + $0xb4] sm:$0x1] }
  0x31   : > { %2842 = vmatpush3.bf16.msra.mxu0 %v3063_v27  ;;  %2747 = vmatprep.subr.bf16.mxu1 %v3064_v28  ;;  %v2414_v27 = vld [vmem:[%s3232_s16 + $0xb0] sm:$0xf]  ;;  %v1256_v35 = vshll.u32 %v2415_v30, 16 }
  0x32   : > { %2843 = vmatprep.subr.bf16.mxu0 %v3065_v31  ;;  %2757 = vmatprep.mubr.bf16.mxu1 %v3078_v32  ;;  %v2417_v32 = vld [vmem:[%s3232_s16 + $0xbc] sm:$0x1]  ;;  %v1247_v33 = vshrl.u32 %v2414_v27, 16  ;;  %v1250_v34 = vshll.u32 %v2414_v27, 16  ;;  %v590_v27 = vshll.u32 %v550_v17, 16 }
  0x33   : > { %2853 = vmatprep.mubr.bf16.mxu0 %v2438_v11  ;;  %v1270_v39 = vshll.u32 %v2417_v32, 16  ;;  %v1258_v44 = vrot.slane %v1256_v35, 5  ;;  %v547_v11 = vld [vmem:[%s3232_s16] sm:$0xf]  ;;  %v3090_v32 = vld [vmem:[%s3563_s1 + $0xa8] sm:$0xff]  }
  0x34   : > { %2748 = vmatpush3.bf16.msra.mxu1 %v3064_v28  ;;  %v2439_v28 = vcombine.low %v1231_v22, %v1245_v23  ;;  %v1249_v40 = vrot.slane %v1247_v33, 4  ;;  %v1252_v41 = vrot.slane %v1250_v34, 5  ;;  %v567_v18 = vshrl.u32 %v547_v11, 16  ;;  %v558_v17 = vld [vmem:[%s3232_s16 + $0x2c] sm:$0x1] }
  0x35   : > { %2844 = vmatpush3.bf16.msra.mxu0 %v3065_v31  ;;  %2749 = vmatprep.subr.bf16.mxu1 %v3066_v38  ;;  %v2416_v31 = vld [vmem:[%s3232_s16 + $0xb8] sm:$0xf]  ;;  %v1272_v46 = vrot.slane %v1270_v39, 5  ;;  %v581_v22 = vshrl.u32 %v549_v16, 16  ;;  %v584_v23 = vshll.u32 %v549_v16, 16 }
  0x36   : > { %2845 = vmatprep.subr.bf16.mxu0 %v3067_v43  ;;  %v1261_v36 = vshrl.u32 %v2416_v31, 16  ;;  %v557_v16 = vld [vmem:[%s3232_s16 + $0x28] sm:$0xf] }
  0x37   : > { %v583_v30 = vrot.slane %v581_v22, 4  ;;  %v637_v22 = vshrl.u32 %v557_v16, 16 }
  0x38   : > { %2750 = vmatpush3.bf16.msra.mxu1 %v3066_v38  ;;  %v1264_v38 = vshll.u32 %v2416_v31, 16  ;;  %v1263_v42 = vrot.slane %v1261_v36, 4  ;;  %v586_v31 = vrot.slane %v584_v23, 5  ;;  %v592_v36 = vrot.slane %v590_v27, 5 }
  0x39   : > { %2846 = vmatpush3.bf16.msra.mxu0 %v3067_v43  ;;  %2751 = vmatprep.subr.bf16.mxu1 %v3068_v47  ;;  %v3084_v43 = vld [vmem:[%s3563_s1 + $0x90] sm:$0xff]   ;;  %v640_v23 = vshll.u32 %v557_v16, 16  ;;  %v2523_v16 = vld [vmem:[%s3232_s16 + $0xc] sm:$0x1] }
  0x3a   : > { %2847 = vmatprep.subr.bf16.mxu0 %v3069_v50  ;;  %v1266_v45 = vrot.slane %v1264_v38, 5  ;;  %v3091_v38 = vld [vmem:[%s3563_s1 + $0x1a8] sm:$0xff]  }
  0x3c   : > { %2752 = vmatpush3.bf16.msra.mxu1 %v3068_v47  ;;  %v1253_v47 = vor.u32 %v1252_v41, %v1249_v40  ;;  %v1267_v54 = vor.u32 %v1266_v45, %v1263_v42  ;;  %v587_v40 = vor.u32 %v586_v31, %v583_v30  ;;  %v551_v41 = vld [vmem:[%s3232_s16 + $0x10] sm:$0xf]  ;;  %v642_v31 = vrot.slane %v640_v23, 5 }
  0x3d   : > { %2848 = vmatpush3.bf16.msra.mxu0 %v3069_v50  ;;  %2753 = vmatprep.subr.bf16.mxu1 %v3071_v2  ;;  %v2419_v50 = vld [vmem:[%s3232_s16 + $0xc4] sm:$0x1]  ;;  %v595_v45 = vshrl.u32 %v551_v41, 16  ;;  %v559_v30 = vld [vmem:[%s3232_s16 + $0x30] sm:$0xf] }
  0x3e   : > { %2849 = vmatprep.subr.bf16.mxu0 %v3073_v6  ;;  %v1284_v58 = vshll.u32 %v2419_v50, 16  ;;  %v1254_v60 = vrot.slane %v1253_v47, 4  ;;  %v1268_v0 = vrot.slane %v1267_v54, 4  ;;  %v554_v47 = vld [vmem:[%s3232_s16 + $0x1c] sm:$0x1] }
  0x40   : > { %2754 = vmatpush3.bf16.msra.mxu1 %v3071_v2  ;;  %v1280_v2 = vrot.slane %v1278_v57, 5  ;;  %v1286_v3 = vrot.slane %v1284_v58, 5  ;;  %v1259_v5 = vsel %vm3303_vm2, %v1254_v60, %v1258_v44  ;;  %v1273_v9 = vsel %vm3303_vm2, %v1268_v0, %v1272_v46  ;;  %v553_v44 = vld [vmem:[%s3232_s16 + $0x18] sm:$0xf]  ;;  %v3094_v60 = vld [vmem:[%s3563_s1 + $0x1b0] sm:$0xff]  }
  0x41   : > { %2850 = vmatpush3.bf16.msra.mxu0 %v3073_v6  ;;  %2755 = vmatprep.subr.bf16.mxu1 %v3076_v14  ;;  %v1291_v6 = vrot.slane %v1289_v61, 4  ;;  %v588_v46 = vrot.slane %v587_v40, 4  ;;  %v609_v50 = vshrl.u32 %v553_v44, 16  ;;  %v612_v54 = vshll.u32 %v553_v44, 16 }
  0x42   : > { %2851 = vmatprep.subr.bf16.mxu0 %v3077_v19  ;;  %v1281_v10 = vor.u32 %v1280_v2, %v1277_v1  ;;  %v618_v58 = vshll.u32 %v554_v47, 16 }
  0x43   : > { %v1295_v15 = vor.u32 %v1294_v7, %v1291_v6  ;;  %v593_v55 = vsel %vm3303_vm2, %v588_v46, %v592_v36  ;;  %v611_v57 = vrot.slane %v609_v50, 4  ;;  %v614_v63 = vrot.slane %v612_v54, 5  ;;  %v3097_v6 = vld [vmem:[%s3563_s1 + $0x1b8] sm:$0xff]   ;;  %v3098_v7 = vld [vmem:[%s3563_s1 + $0xc0] sm:$0xff]  }
  0x44   : > { %2756 = vmatpush3.bf16.msra.mxu1 %v3076_v14  ;;  %v2440_v14 = vcombine.low %v1259_v5, %v1273_v9  ;;  %v1282_v20 = vrot.slane %v1281_v10, 4  ;;  %v3100_v10 = vld [vmem:[%s3563_s1 + $0x1c0] sm:$0xff]   ;;  %v3106_v50 = vld [vmem:[%s3563_s1 + $0xd8] sm:$0xff]  }
  0x45   : > { %2852 = vmatpush3.bf16.msra.mxu0 %v3077_v19  ;;  %2765 = vmatprep.subr.bf16.mxu1 %v3079_v21  ;;  %v570_v19 = vshll.u32 %v547_v11, 16  ;;  %v615_v1 = vor.u32 %v614_v63, %v611_v57  ;;  %v3101_v11 = vld [vmem:[%s3232_s16 + $0x18] ss:$8 sps:$4 sm:$0xff]  }
  0x46   : > { %2861 = vmatprep.subr.bf16.mxu0 %v3080_v24 }
  0x47   : > { %2758 = vmatmul.mubr.bf16.vlgmr.msra.gmra.mrb[0].mxu1 %v3081_v25  ;;  %v569_v25 = vrot.slane %v567_v18, 4  ;;  %v616_v5 = vrot.slane %v615_v1, 4  ;;  %v3103_v18 = vld [vmem:[%s3563_s1 + $0x1c8] sm:$0xff]   ;;  %v3108_v1 = vld [vmem:[%s3563_s1 + $0xe0] sm:$0xff]  }
  0x48   : > { %2766 = vmatpush3.bf16.msra.mxu1 %v3079_v21  ;;  %2854 = vmatmul.mubr.bf16.vlgmr.msra.gmra.mrb[0].mxu0 %v2439_v28  ;;  %v576_v21 = vshll.u32 %v548_v12, 16  ;;  %v3089_v28 = vld [vmem:[%s3563_s1 + $0x1a0] sm:$0xff]  }
  0x49   : > { %2862 = vmatpush3.bf16.msra.mxu0 %v3080_v24  ;;  %2767 = vmatprep.subr.bf16.mxu1 %v3082_v26  ;;  %v1296_v24 = vrot.slane %v1295_v15, 4  ;;  %v555_v12 = vld [vmem:[%s3232_s16 + $0x20] sm:$0xf]  ;;  %v556_v15 = vld [vmem:[%s3232_s16 + $0x24] sm:$0x1] }
  0x4a   : > { %2863 = vmatprep.subr.bf16.mxu0 %v3083_v29  ;;  %2761 = vmatprep.mubr.bf16.mxu1 %v3092_v37  ;;  %v578_v35 = vrot.slane %v576_v21, 5  ;;  %v3099_v37 = vld [vmem:[%s3232_s16 + $0x8] ss:$8 sps:$4 sm:$0xff]   ;;  %v632_v21 = vshll.u32 %v556_v15, 16 }
  0x4b   : > { %2857 = vmatprep.mubr.bf16.mxu0 %v2440_v14  ;;  %v1301_v33 = vsel %vm3303_vm2, %v1296_v24, %v1300_v8  ;;  %v3102_v14 = vld [vmem:[%s3563_s1 + $0xc8] sm:$0xff]   ;;  %v646_v24 = vshll.u32 %v558_v17, 16  ;;  %v2524_v17 = vld [vmem:[%s3232_s16 + $0x10] sm:$0xf] }
  0x4c   : > { %2768 = vmatpush3.bf16.msra.mxu1 %v3082_v26  ;;  %v572_v26 = vrot.slane %v570_v19, 5  ;;  %v623_v19 = vshrl.u32 %v555_v12, 16  ;;  %v2522_v15 = vld [vmem:[%s3232_s16 + $0x8] sm:$0xf]  ;;  %v1832_v23 = vshll.u32 %v2524_v17, 16 }
  0x4d   : > { %2864 = vmatpush3.bf16.msra.mxu0 %v3083_v29  ;;  %2769 = vmatprep.subr.bf16.mxu1 %v3084_v43  ;;  %v1287_v29 = vsel %vm3303_vm2, %v1282_v20, %v1286_v3  ;;  %v620_v3 = vrot.slane %v618_v58, 5  ;;  %v626_v20 = vshll.u32 %v555_v12, 16  ;;  %v3114_v58 = vld [vmem:[%s3232_s16 + $0x38] ss:$8 sps:$4 sm:$0xff]  }
  0x4e   : > { %2865 = vmatprep.subr.bf16.mxu0 %v3085_v52  ;;  %v573_v34 = vor.u32 %v572_v26, %v569_v25  ;;  %v2441_v39 = vcombine.low %v1287_v29, %v1301_v33  ;;  %v3112_v25 = vld [vmem:[%s3232_s16 + $0x28] ss:$8 sps:$4 sm:$0xff]   ;;  %v625_v26 = vrot.slane %v623_v19, 4  ;;  %v639_v29 = vrot.slane %v637_v22, 4  ;;  %v560_v33 = vld [vmem:[%s3232_s16 + $0x34] sm:$0x1] }
  0x4f   : > { %2762 = vmatmul.mubr.bf16.gmra.mrb[4].mxu1 %v3095_v48  ;;  %v598_v48 = vshll.u32 %v551_v41, 16  ;;  %v621_v9 = vsel %vm3303_vm2, %v616_v5, %v620_v3  ;;  %v628_v27 = vrot.slane %v626_v20, 5  ;;  %v660_v40 = vshll.u32 %v560_v33, 16  ;;  %v3105_v41 = vld [vmem:[%s3563_s1 + $0x1d0] sm:$0xff]   ;;  %v3109_v5 = vld [vmem:[%s3563_s1 + $0x1e0] sm:$0xff]   ;;  %v3116_v12 = vld [vmem:[%s3563_s1 + $0xf8] sm:$0xff]  }
  0x50   : > { %2770 = vmatpush3.bf16.msra.mxu1 %v3084_v43  ;;  %v574_v42 = vrot.slane %v573_v34, 4  ;;  %v552_v43 = vld [vmem:[%s3232_s16 + $0x14] sm:$0x1]  ;;  %2858 = vmatmul.mubr.bf16.gmra.mrb[4].mxu0 %v2441_v39  ;;  %v561_v34 = vld [vmem:[%s3232_s16 + $0x38] sm:$0xf]  ;;  %v654_v39 = vshll.u32 %v559_v30, 16 }
  0x51   : > { %2866 = vmatpush3.bf16.msra.mxu0 %v3085_v52  ;;  %2771 = vmatprep.subr.bf16.mxu1 %v3086_v59  ;;  %v604_v49 = vshll.u32 %v552_v43, 16  ;;  %v597_v52 = vrot.slane %v595_v45, 4  ;;  %v600_v56 = vrot.slane %v598_v48, 5  ;;  %v629_v36 = vor.u32 %v628_v27, %v625_v26  ;;  %v2533_v33 = vld [vmem:[%s3232_s16 + $0x34] sm:$0x1] }
  0x52   : > { %2867 = vmatprep.subr.bf16.mxu0 %v3087_v4  ;;  %v579_v51 = vsel %vm3303_vm2, %v574_v42, %v578_v35  ;;  %2877 = vmatprep.mubr.bf16.mxu0 %v3099_v37  ;;  %v3104_v35 = vld [vmem:[%s3563_s1 + $0xd0] sm:$0xff]   ;;  %v562_v37 = vld [vmem:[%s3232_s16 + $0x3c] sm:$0x1]  ;;  %v643_v42 = vor.u32 %v642_v31, %v639_v29  ;;  %v665_v43 = vshrl.u32 %v561_v34, 16  ;;  %v668_v44 = vshll.u32 %v561_v34, 16 }
  0x53   : > { %v2322_v61 = vcombine.low %v579_v51, %v593_v55  ;;  %v606_v62 = vrot.slane %v604_v49, 5  ;;  %v601_v0 = vor.u32 %v600_v56, %v597_v52  ;;  %v674_v45 = vshll.u32 %v562_v37, 16  ;;  %v2532_v29 = vld [vmem:[%s3232_s16 + $0x30] sm:$0xf]  ;;  %v3121_v34 = vld [vmem:[%s3232_s16 + $0x60] ss:$8 sps:$4 sm:$0xff]  }
  0x54   : > { %2772 = vmatpush3.bf16.msra.mxu1 %v3086_v59  ;;  %v3093_v59 = vld [vmem:[%s3563_s1 + $0xb0] sm:$0xff]   ;;  %v630_v46 = vrot.slane %v629_v36, 4  ;;  %v656_v48 = vrot.slane %v654_v39, 5  ;;  %v662_v49 = vrot.slane %v660_v40, 5  ;;  %v644_v51 = vrot.slane %v643_v42, 4  ;;  %v3123_v39 = vld [vmem:[%s3563_s1 + $0x208] sm:$0xff]  }
  0x55   : > { %2868 = vmatpush3.bf16.msra.mxu0 %v3087_v4  ;;  %2773 = vmatprep.subr.bf16.mxu1 %v3088_v13  ;;  %v602_v2 = vrot.slane %v601_v0, 4  ;;  %v3096_v4 = vld [vmem:[%s3563_s1 + $0xb8] sm:$0xff]   ;;  %v667_v52 = vrot.slane %v665_v43, 4  ;;  %v670_v54 = vrot.slane %v668_v44, 5  ;;  %v676_v55 = vrot.slane %v674_v45, 5 }
  0x56   : > { %2869 = vmatprep.subr.bf16.mxu0 %v3089_v28  ;;  %2781 = vmatprep.mubr.bf16.mxu1 %v2322_v61  ;;  %v3107_v61 = vld [vmem:[%s3563_s1 + $0x1d8] sm:$0xff]   ;;  %v1815_v19 = vshrl.u32 %v2522_v15, 16  ;;  %v1818_v20 = vshll.u32 %v2522_v15, 16  ;;  %v1829_v22 = vshrl.u32 %v2524_v17, 16  ;;  %v1888_v42 = vshll.u32 %v2532_v29, 16  ;;  %v3130_v15 = vld [vmem:[%s3563_s1 + $0x220] sm:$0xff]  }
  0x57   : > { %v607_v8 = vsel %vm3303_vm2, %v602_v2, %v606_v62  ;;  %v1894_v43 = vshll.u32 %v2533_v33, 16  ;;  %v3124_v44 = vld [vmem:[%s3232_s16 + $0xb0] ss:$8 sps:$4 sm:$0xff]  }
  0x58   : > { %2774 = vmatpush3.bf16.msra.mxu1 %v3088_v13  ;;  %v2323_v13 = vcombine.low %v607_v8, %v621_v9  ;;  %v3110_v8 = vld [vmem:[%s3563_s1 + $0xe8] sm:$0xff]   ;;  %v1817_v26 = vrot.slane %v1815_v19, 4  ;;  %v1820_v27 = vrot.slane %v1818_v20, 5  ;;  %v1831_v31 = vrot.slane %v1829_v22, 4 }
  0x59   : > { %2870 = vmatpush3.bf16.msra.mxu0 %v3089_v28  ;;  %2775 = vmatprep.subr.bf16.mxu1 %v3090_v32  ;;  %v634_v28 = vrot.slane %v632_v21, 5  ;;  %v3111_v9 = vld [vmem:[%s3563_s1 + $0x1e8] sm:$0xff]   ;;  %v1824_v21 = vshll.u32 %v2523_v16, 16 }
  0x5a   : > { %2871 = vmatprep.subr.bf16.mxu0 %v3091_v38  ;;  %v3131_v20 = vld [vmem:[%s3563_s1 + $0x228] sm:$0xff]  }
  0x5b   : > { %v635_v56 = vsel %vm3303_vm2, %v630_v46, %v634_v28  ;;  %v2531_v28 = vld [vmem:[%s3232_s16 + $0x2c] sm:$0x1]  ;;  %v1826_v45 = vrot.slane %v1824_v21, 5  ;;  %v2535_v21 = vld [vmem:[%s3232_s16 + $0x3c] sm:$0x1] }
  0x5c   : > { %2776 = vmatpush3.bf16.msra.mxu1 %v3090_v32  ;;  %v648_v32 = vrot.slane %v646_v24, 5 }
  0x5d   : > { %2872 = vmatpush3.bf16.msra.mxu0 %v3091_v38  ;;  %2777 = vmatprep.subr.bf16.mxu1 %v3093_v59  ;;  %v651_v38 = vshrl.u32 %v559_v30, 16  ;;  %v3120_v30 = vld [vmem:[%s3232_s16 + $0xa0] ss:$8 sps:$4 sm:$0xff]  }
  0x5e   : > { %2873 = vmatprep.subr.bf16.mxu0 %v3094_v60 }
  0x5f   : > { %v653_v47 = vrot.slane %v651_v38, 4  ;;  %v1880_v38 = vshll.u32 %v2531_v28, 16 }
  0x60   : > { %2778 = vmatpush3.bf16.msra.mxu1 %v3093_v59  ;;  %v649_v59 = vsel %vm3303_vm2, %v644_v51, %v648_v32  ;;  %v1834_v32 = vrot.slane %v1832_v23, 5 }
  0x61   : > { %2874 = vmatpush3.bf16.msra.mxu0 %v3094_v60  ;;  %2779 = vmatprep.subr.bf16.mxu1 %v3096_v4  ;;  %v657_v57 = vor.u32 %v656_v48, %v653_v47  ;;  %v671_v60 = vor.u32 %v670_v54, %v667_v52  ;;  %v2324_v62 = vcombine.low %v635_v56, %v649_v59  ;;  %v1890_v54 = vrot.slane %v1888_v42, 5 }
  0x62   : > { %2875 = vmatprep.subr.bf16.mxu0 %v3097_v6  ;;  %v1835_v40 = vor.u32 %v1834_v32, %v1831_v31  ;;  %v1882_v56 = vrot.slane %v1880_v38, 5  ;;  %v1896_v59 = vrot.slane %v1894_v43, 5  ;;  %v2527_v31 = vld [vmem:[%s3232_s16 + $0x1c] sm:$0x1]  ;;  %v2529_v32 = vld [vmem:[%s3232_s16 + $0x24] sm:$0x1] }
  0x63   : > { %v658_v63 = vrot.slane %v657_v57, 4  ;;  %v672_v0 = vrot.slane %v671_v60, 4  ;;  %v3128_v57 = vld [vmem:[%s3563_s1 + $0x210] sm:$0xff]  }
  0x64   : > { %2780 = vmatpush3.bf16.msra.mxu1 %v3096_v4  ;;  %v3119_v4 = vld [vmem:[%s3232_s16 + $0x50] ss:$8 sps:$4 sm:$0xff]   ;;  %v1836_v51 = vrot.slane %v1835_v40, 4 }
  0x65   : > { %2876 = vmatpush3.bf16.msra.mxu0 %v3097_v6  ;;  %2789 = vmatprep.subr.bf16.mxu1 %v3098_v7  ;;  %v663_v2 = vsel %vm3303_vm2, %v658_v63, %v662_v49  ;;  %v677_v3 = vsel %vm3303_vm2, %v672_v0, %v676_v55  ;;  %v3125_v49 = vld [vmem:[%s3232_s16 + $0x70] ss:$8 sps:$4 sm:$0xff]  }
  0x66   : > { %2885 = vmatprep.subr.bf16.mxu0 %v3100_v10  ;;  %v2325_v6 = vcombine.low %v663_v2, %v677_v3  ;;  %v3129_v3 = vld [vmem:[%s3563_s1 + $0x218] sm:$0xff]  }
  0x67   : > { %2782 = vmatmul.mubr.bf16.vlgmr.msra.gmra.mrb[0].mxu1 %v2323_v13  ;;  %v3117_v13 = vld [vmem:[%s3563_s1 + $0x1f8] sm:$0xff]  }
  0x68   : > { %2790 = vmatpush3.bf16.msra.mxu1 %v3098_v7  ;;  %2878 = vmatmul.mubr.bf16.vlgmr.msra.gmra.mrb[0].mxu0 %v3101_v11  ;;  %v3118_v7 = vld [vmem:[%s3232_s16 + $0x90] ss:$8 sps:$4 sm:$0xff]  }
  0x69   : > { %2886 = vmatpush3.bf16.msra.mxu0 %v3100_v10  ;;  %2791 = vmatprep.subr.bf16.mxu1 %v3102_v14  ;;  %v3113_v10 = vld [vmem:[%s3563_s1 + $0xf0] sm:$0xff]  }
  0x6a   : > { %2887 = vmatprep.subr.bf16.mxu0 %v3103_v18  ;;  %2881 = vmatprep.mubr.bf16.mxu0 %v3112_v25  ;;  %v3115_v11 = vld [vmem:[%s3563_s1 + $0x1f0] sm:$0xff]   ;;  %v2530_v25 = vld [vmem:[%s3232_s16 + $0x28] sm:$0xf] }
  0x6b   : > { %2785 = vmatprep.mubr.bf16.mxu1 %v2324_v62  ;;  %v1871_v36 = vshrl.u32 %v2530_v25, 16  ;;  %v1874_v37 = vshll.u32 %v2530_v25, 16 }
  0x6c   : > { %2792 = vmatpush3.bf16.msra.mxu1 %v3102_v14  ;;  %v3122_v14 = vld [vmem:[%s3563_s1 + $0x200] sm:$0xff]  }
  0x6d   : > { %2888 = vmatpush3.bf16.msra.mxu0 %v3103_v18  ;;  %2793 = vmatprep.subr.bf16.mxu1 %v3104_v35  ;;  %v2525_v18 = vld [vmem:[%s3232_s16 + $0x14] sm:$0x1]  ;;  %v1873_v47 = vrot.slane %v1871_v36, 4  ;;  %v1876_v48 = vrot.slane %v1874_v37, 5 }
  0x6e   : > { %2889 = vmatprep.subr.bf16.mxu0 %v3105_v41  ;;  %v1838_v24 = vshll.u32 %v2525_v18, 16  ;;  %v3132_v37 = vld [vmem:[%s3563_s1 + $0x230] sm:$0xff]  }
  0x6f   : > { %2786 = vmatmul.mubr.bf16.gmra.mrb[4].mxu1 %v2325_v6  ;;  %v1877_v55 = vor.u32 %v1876_v48, %v1873_v47  ;;  %v2536_v6 = vld [vmem:[%s3232_s16 + $0x40] sm:$0xf] }
  0x70   : > { %2794 = vmatpush3.bf16.msra.mxu1 %v3104_v35  ;;  %2882 = vmatmul.mubr.bf16.gmra.mrb[4].mxu0 %v3114_v58  ;;  %v1821_v35 = vor.u32 %v1820_v27, %v1817_v26  ;;  %v1840_v46 = vrot.slane %v1838_v24, 5 }
  0x71   : > { %2890 = vmatpush3.bf16.msra.mxu0 %v3105_v41  ;;  %2795 = vmatprep.subr.bf16.mxu1 %v3106_v50  ;;  %v1885_v41 = vshrl.u32 %v2532_v29, 16  ;;  %v1878_v60 = vrot.slane %v1877_v55, 4 }
  0x72   : > { %2891 = vmatprep.subr.bf16.mxu0 %v3107_v61  ;;  %2901 = vmatprep.mubr.bf16.mxu0 %v3119_v4  ;;  %v1841_v63 = vsel %vm3303_vm2, %v1836_v51, %v1840_v46  ;;  %v3133_v46 = vld [vmem:[%s3563_s1 + $0x238] sm:$0xff]  }
  0x73   : > { %2805 = vmatprep.mubr.bf16.mxu1 %v3118_v7  ;;  %v1887_v52 = vrot.slane %v1885_v41, 4  ;;  %v1883_v2 = vsel %vm3303_vm2, %v1878_v60, %v1882_v56  ;;  %v1866_v41 = vshll.u32 %v2529_v32, 16 }
  0x74   : > { %2796 = vmatpush3.bf16.msra.mxu1 %v3106_v50  ;;  %v1822_v50 = vrot.slane %v1821_v35, 4 }
  0x75   : > { %2892 = vmatpush3.bf16.msra.mxu0 %v3107_v61  ;;  %2797 = vmatprep.subr.bf16.mxu1 %v3108_v1  ;;  %v1891_v58 = vor.u32 %v1890_v54, %v1887_v52  ;;  %v3126_v61 = vld [vmem:[%s3232_s16 + $0xc0] ss:$8 sps:$4 sm:$0xff]  }
  0x76   : > { %2893 = vmatprep.subr.bf16.mxu0 %v3109_v5  ;;  %v1827_v62 = vsel %vm3303_vm2, %v1822_v50, %v1826_v45  ;;  %v1868_v50 = vrot.slane %v1866_v41, 5 }
  0x77   : > { %v1892_v0 = vrot.slane %v1891_v58, 4  ;;  %v2554_v7 = vcombine.low %v1827_v62, %v1841_v63 }
  0x78   : > { %2798 = vmatpush3.bf16.msra.mxu1 %v3108_v1  ;;  %v3127_v1 = vld [vmem:[%s3232_s16 + $0x80] ss:$8 sps:$4 sm:$0xff]  }
  0x79   : > { %2894 = vmatpush3.bf16.msra.mxu0 %v3109_v5  ;;  %2799 = vmatprep.subr.bf16.mxu1 %v3110_v8  ;;  %v1897_v4 = vsel %vm3303_vm2, %v1892_v0, %v1896_v59  ;;  %v2534_v5 = vld [vmem:[%s3232_s16 + $0x38] sm:$0xf] }
  0x7a   : > { %2895 = vmatprep.subr.bf16.mxu0 %v3111_v9 }
  0x7c   : > { %2800 = vmatpush3.bf16.msra.mxu1 %v3110_v8  ;;  %v2526_v8 = vld [vmem:[%s3232_s16 + $0x18] sm:$0xf] }
  0x7d   : > { %2896 = vmatpush3.bf16.msra.mxu0 %v3111_v9  ;;  %2801 = vmatprep.subr.bf16.mxu1 %v3113_v10  ;;  %v2528_v9 = vld [vmem:[%s3232_s16 + $0x20] sm:$0xf]  ;;  %v1843_v16 = vshrl.u32 %v2526_v8, 16  ;;  %v1846_v17 = vshll.u32 %v2526_v8, 16 }
  0x7e   : > { %2897 = vmatprep.subr.bf16.mxu0 %v3115_v11  ;;  %v1857_v18 = vshrl.u32 %v2528_v9, 16  ;;  %v1860_v19 = vshll.u32 %v2528_v9, 16  ;;  %v2566_v9 = vld [vmem:[%s3564_s2] ss:$0 sm:$0xff] }
  0x7f   : > { %v1845_v26 = vrot.slane %v1843_v16, 4  ;;  %v1848_v27 = vrot.slane %v1846_v17, 5 }
  0x80   : > { %2802 = vmatpush3.bf16.msra.mxu1 %v3113_v10  ;;  %v2556_v10 = vcombine.low %v1883_v2, %v1897_v4  ;;  %v1859_v28 = vrot.slane %v1857_v18, 4  ;;  %v1862_v29 = vrot.slane %v1860_v19, 5 }
  0x81   : > { %2898 = vmatpush3.bf16.msra.mxu0 %v3115_v11  ;;  %2803 = vmatprep.subr.bf16.mxu1 %v3116_v12  ;;  %v1899_v11 = vshrl.u32 %v2534_v5, 16  ;;  %v1849_v38 = vor.u32 %v1848_v27, %v1845_v26 }
  0x82   : > { %2899 = vmatprep.subr.bf16.mxu0 %v3117_v13  ;;  %v1863_v40 = vor.u32 %v1862_v29, %v1859_v28 }
  0x83   : > { %v1901_v22 = vrot.slane %v1899_v11, 4  ;;  %v1850_v47 = vrot.slane %v1849_v38, 4 }
  0x84   : > { %2804 = vmatpush3.bf16.msra.mxu1 %v3116_v12  ;;  %v1902_v12 = vshll.u32 %v2534_v5, 16 }
  0x85   : > { %2900 = vmatpush3.bf16.msra.mxu0 %v3117_v13  ;;  %2933 = vmatprep.subr.bf16.mxu1 %v3122_v14  ;;  %v1913_v13 = vshrl.u32 %v2536_v6, 16 }
  0x86   : > { %2909 = vmatprep.subr.bf16.mxu0 %v3122_v14  ;;  %v1904_v23 = vrot.slane %v1902_v12, 5 }
  0x87   : > { %2806 = vmatmul.mubr.bf16.vlgmr.msra.gmra.mrb[0].mxu1 %v3120_v30  ;;  %v1915_v24 = vrot.slane %v1913_v13, 4  ;;  %v2537_v30 = vld [vmem:[%s3232_s16 + $0x44] sm:$0x1] }
  0x88   : > { %2902 = vmatmul.mubr.bf16.vlgmr.msra.gmra.mrb[0].mxu0 %v3121_v34  ;;  %2941 = vmatpush3.bf16.msra.mxu1 %v3122_v14  ;;  %v1905_v33 = vor.u32 %v1904_v23, %v1901_v22  ;;  %v1908_v34 = vshll.u32 %v2535_v21, 16  ;;  %v1922_v36 = vshll.u32 %v2537_v30, 16 }
  0x89   : > { %2910 = vmatpush3.bf16.msra.mxu0 %v3122_v14  ;;  %2934 = vmatprep.subr.bf16.mxu1 %v3123_v39  ;;  %v1916_v14 = vshll.u32 %v2536_v6, 16 }
  0x8a   : > { %2911 = vmatprep.subr.bf16.mxu0 %v3123_v39  ;;  %2809 = vmatprep.mubr.bf16.mxu1 %v3124_v44  ;;  %v1906_v42 = vrot.slane %v1905_v33, 4  ;;  %v1910_v43 = vrot.slane %v1908_v34, 5  ;;  %v1924_v45 = vrot.slane %v1922_v36, 5 }
  0x8b   : > { %2905 = vmatprep.mubr.bf16.mxu0 %v3125_v49  ;;  %v1918_v25 = vrot.slane %v1916_v14, 5  ;;  %v1864_v49 = vrot.slane %v1863_v40, 4 }
  0x8c   : > { %2942 = vmatpush3.bf16.msra.mxu1 %v3123_v39  ;;  %v1911_v51 = vsel %vm3303_vm2, %v1906_v42, %v1910_v43 }
  0x8d   : > { %2912 = vmatpush3.bf16.msra.mxu0 %v3123_v39  ;;  %2935 = vmatprep.subr.bf16.mxu1 %v3128_v57  ;;  %v1919_v35 = vor.u32 %v1918_v25, %v1915_v24  ;;  %v1852_v39 = vshll.u32 %v2527_v31, 16  ;;  %v1869_v55 = vsel %vm3303_vm2, %v1864_v49, %v1868_v50 }
  0x8e   : > { %2913 = vmatprep.subr.bf16.mxu0 %v3128_v57 }
  0x8f   : > { %2810 = vmatmul.mubr.bf16.gmra.mrb[4].mxu1 %v3126_v61  ;;  %v1920_v44 = vrot.slane %v1919_v35, 4  ;;  %v1854_v48 = vrot.slane %v1852_v39, 5 }
  0x90   : > { %2906 = vmatmul.mubr.bf16.gmra.mrb[4].mxu0 %v3127_v1  ;;  %2943 = vmatpush3.bf16.msra.mxu1 %v3128_v57 }
  0x91   : > { %2914 = vmatpush3.bf16.msra.mxu0 %v3128_v57  ;;  %2936 = vmatprep.subr.bf16.mxu1 %v3129_v3  ;;  %v1925_v52 = vsel %vm3303_vm2, %v1920_v44, %v1924_v45  ;;  %v1855_v54 = vsel %vm3303_vm2, %v1850_v47, %v1854_v48 }
  0x92   : > { %2915 = vmatprep.subr.bf16.mxu0 %v3129_v3  ;;  %2925 = vmatprep.mubr.bf16.mxu0 %v2554_v7  ;;  %v2557_v56 = vcombine.low %v1911_v51, %v1925_v52  ;;  %v2555_v57 = vcombine.low %v1855_v54, %v1869_v55 }
  0x93   : > { %2929 = vmatprep.mubr.bf16.mxu1 %v2556_v10 }
  0x94   : > { %2944 = vmatpush3.bf16.msra.mxu1 %v3129_v3 }
  0x95   : > { %2916 = vmatpush3.bf16.msra.mxu0 %v3129_v3  ;;  %2937 = vmatprep.subr.bf16.mxu1 %v3130_v15 }
  0x96   : > { %2917 = vmatprep.subr.bf16.mxu0 %v3130_v15 }
  0x98   : > { %2945 = vmatpush3.bf16.msra.mxu1 %v3130_v15 }
  0x99   : > { %2918 = vmatpush3.bf16.msra.mxu0 %v3130_v15  ;;  %2938 = vmatprep.subr.bf16.mxu1 %v3131_v20 }
  0x9a   : > { %2919 = vmatprep.subr.bf16.mxu0 %v3131_v20 }
  0x9c   : > { %2946 = vmatpush3.bf16.msra.mxu1 %v3131_v20 }
  0x9d   : > { %2920 = vmatpush3.bf16.msra.mxu0 %v3131_v20  ;;  %2939 = vmatprep.subr.bf16.mxu1 %v3132_v37 }
  0x9e   : > { %2921 = vmatprep.subr.bf16.mxu0 %v3132_v37 }
  0xa0   : > { %2947 = vmatpush3.bf16.msra.mxu1 %v3132_v37 }
  0xa1   : > { %2922 = vmatpush3.bf16.msra.mxu0 %v3132_v37  ;;  %2940 = vmatprep.subr.bf16.mxu1 %v3133_v46 }
  0xa2   : > { %2923 = vmatprep.subr.bf16.mxu0 %v3133_v46 }
  0xa4   : > { %2948 = vmatpush3.bf16.msra.mxu1 %v3133_v46 }
  0xa5   : > { %2924 = vmatpush3.bf16.msra.mxu0 %v3133_v46 }
  0xa7   : > { %2930 = vmatmul.mubr.bf16.vlgmr.msra.gmra.mrb[8].mxu1 %v2557_v56 }
  0xa8   : > { %2926 = vmatmul.mubr.bf16.vlgmr.msra.gmra.mrb[0].mxu0 %v2555_v57 }
 0x15a   : > { %v2807_v58 = vpop.f32.mrb[0].mxu1 }
 0x15b   : > { %v964_v59 = vpop.f32.mrb[1].mxu1 }
 0x15c   : > { %v2808_v60 = vpop.f32.mrb[2].mxu1 }
 0x15d   : > { %v967_v61 = vpop.f32.mrb[3].mxu1 }
 0x162   : > { %v2811_v62 = vpop.f32.mrb[4].mxu1 }
 0x163   : > { %v2907_v63 = vpop.f32.mrb[4].mxu0  ;;  %v980_v0 = vpop.f32.mrb[5].mxu1 }
 0x164   : > { %v2953_v1 = vadd.f32 %v2907_v63, %v2811_v62  ;;  %v1775_v2 = vpop.f32.mrb[5].mxu0  ;;  %v2812_v3 = vpop.f32.mrb[6].mxu1 }
 0x165   : > { %v2955_v4 = vadd.f32 %v1775_v2, %v980_v0  ;;  %v2908_v53 = vpop.f32.mrb[6].mxu0  ;;  %v983_v5 = vpop.f32.mrb[7].mxu1 }
 0x166   : > { %v2957_v6 = vadd.f32 %v2908_v53, %v2812_v3  ;;  %v1778_v7 = vpop.f32.mrb[7].mxu0 }
 0x167   : > { %v2959_v8 = vadd.f32 %v1778_v7, %v983_v5 }
 0x17a   : > { %v2931_v10 = vpop.f32.mrb[8].mxu1 }
 0x17b   : > { %v2927_v11 = vpop.f32.mrb[0].mxu0  ;;  %v2954_v12 = vadd.f32 %v2953_v1, %v2931_v10  ;;  %v2057_v13 = vpop.f32.mrb[9].mxu1 }
 0x17c   : > { %v2949_v14 = vadd.f32 %v2927_v11, %v2807_v58  ;;  %v2041_v15 = vpop.f32.mrb[1].mxu0  ;;  %v2956_v16 = vadd.f32 %v2955_v4, %v2057_v13  ;;  %v2932_v17 = vpop.f32.mrb[10].mxu1 }
 0x17d   : > { %v2093_v18 = vadd.f32 %v2954_v12, %v2566_v9  ;;  %v2950_v19 = vadd.f32 %v2041_v15, %v964_v59  ;;  %v2928_v20 = vpop.f32.mrb[2].mxu0  ;;  %v2958_v21 = vadd.f32 %v2957_v6, %v2932_v17  ;;  %v2060_v22 = vpop.f32.mrb[11].mxu1 }
 0x17e   : > { %v2089_v23 = vadd.f32 %v2949_v14, %v2566_v9  ;;  %v2091_v24 = vadd.f32 %v2956_v16, %v2566_v9  ;;  %v2951_v25 = vadd.f32 %v2928_v20, %v2808_v60  ;;  %v2044_v26 = vpop.f32.mrb[3].mxu0  ;;  %v2960_v27 = vadd.f32 %v2959_v8, %v2060_v22 }
 0x17f   : > { %v2087_v28 = vadd.f32 %v2950_v19, %v2566_v9  ;;  %v2094_v29 = vadd.f32 %v2958_v21, %v2566_v9  ;;  %v2952_v30 = vadd.f32 %v2044_v26, %v967_v61  ;;  %v2101_v33 = vmax.f32 %v2093_v18, 0.0 }
 0x180   : > { %v2090_v31 = vadd.f32 %v2951_v25, %v2566_v9  ;;  %v2092_v32 = vadd.f32 %v2960_v27, %v2566_v9  ;;  %v2097_v36 = vmax.f32 %v2089_v23, 0.0  ;;  %v2099_v37 = vmax.f32 %v2091_v24, 0.0 }
 0x181   : > { %v2102_v34 = vmax.f32 %v2094_v29, 0.0  ;;  %v2088_v35 = vadd.f32 %v2952_v30, %v2566_v9  ;;  %v2095_v40 = vmax.f32 %v2087_v28, 0.0 }
 0x182   : > { %v2098_v38 = vmax.f32 %v2090_v31, 0.0  ;;  %v2100_v39 = vmax.f32 %v2092_v32, 0.0 }
 0x183   : > { %v2604_v41 = vpack.c.bf16 %v2102_v34, %v2101_v33  ;;  %v2096_v42 = vmax.f32 %v2088_v35, 0.0 }
 0x184   : > { %v2594_v43 = vpack.c.bf16 %v2098_v38, %v2097_v36  ;;  %v2599_v44 = vpack.c.bf16 %v2100_v39, %v2099_v37 }
 0x185   : > { %2608 = vst [vmem:[%s221_s8 + $0x18] sm:$0xff] %v2604_v41   ;;  %v2589_v45 = vpack.c.bf16 %v2096_v42, %v2095_v40 }
 0x186   : > { %2606 = vst [vmem:[%s221_s8 + $0x8] sm:$0xff] %v2594_v43   ;;  %2607 = vst [vmem:[%s221_s8 + $0x10] sm:$0xff] %v2599_v44  }
 0x187   : > { %2590 = vst [vmem:[%s221_s8] sm:$0xff] %v2589_v45  }
 0x188 PF: > { %s13_s14 = sadd.s32 1, %s3156_s14   ;;  %s3568_s12 = smov %s3152_s13 }
 0x189   : > { %p10_p5 = scmp.ge.s32.totalorder %s13_s14, 4   ;;  %s3569_s13 = smov %s3571_s15 }
 0x18b   :  { %12 = sbr.rel (!%p10_p5) target bundleno = 2 (0x2), region = 81 }

</bundles_post_ra>
